<compile_context>
chip_gen: v6e
topology: v6e:2x2x1
jax: 0.10.0
libtpu: 0.0.40
codegen_flags: <defaults>
</compile_context>

<pallas_src>
import jax
import jax.numpy as jnp
from jax.experimental import pallas as pl
from jax.experimental.pallas import tpu as pltpu


# ----------------------------------------------------------------------------
# Fused Pallas kernel: one grid step == one image.
# Activation layouts inside the kernel (per image, all 2-D, lane-dense-ish):
#   conv1 out  : (28, 168)  columns = c1*28 + w   (6 channels)
#   pool1 out  : (14,  84)  columns = c1*14 + w
#   conv2 out  : (10, 160)  columns = c2*10 + w   (16 channels)
#   pool2 out  : ( 5,  80)  columns = c2*5  + w
# ----------------------------------------------------------------------------
def _lenet5_kernel(x_ref, b1w_ref, bias1_ref, b2w_ref, bias2_ref,
                   rp1_ref, cp1_ref, rp2_ref, cp2_ref,
                   wf1_ref, bf1_ref, wf2_ref, bf2_ref, wf3_ref, bf3_ref,
                   out_ref):
    f32 = jnp.float32
    x = x_ref[0]                                              # (32, 32)

    # conv1 + bias + ReLU : 5 banded matmuls (one per kernel row tap).
    acc1 = jnp.zeros((28, 168), f32)
    for di in range(5):
        acc1 += jnp.dot(x[di:di + 28, :], b1w_ref[di],
                        preferred_element_type=f32)
    h1 = jnp.maximum(acc1 + bias1_ref[...], 0.0)              # (28, 168)

    # pool1 (2x2 / stride 2): pairwise max + 0/1 decimation matmuls.
    rmax = jnp.maximum(h1[0:27, :], h1[1:28, :])
    pr = jnp.dot(rp1_ref[...], rmax, preferred_element_type=f32)     # (14, 168)
    cmax = jnp.maximum(pr[:, 0:167], pr[:, 1:168])
    p1 = jnp.dot(cmax, cp1_ref[...], preferred_element_type=f32)     # (14, 84)

    # conv2 + bias + ReLU.
    acc2 = jnp.zeros((10, 160), f32)
    for di in range(5):
        acc2 += jnp.dot(p1[di:di + 10, :], b2w_ref[di],
                        preferred_element_type=f32)
    h2 = jnp.maximum(acc2 + bias2_ref[...], 0.0)              # (10, 160)

    # pool2.
    rmax2 = jnp.maximum(h2[0:9, :], h2[1:10, :])
    qr = jnp.dot(rp2_ref[...], rmax2, preferred_element_type=f32)    # (5, 160)
    cmax2 = jnp.maximum(qr[:, 0:159], qr[:, 1:160])
    a = jnp.dot(cmax2, cp2_ref[...], preferred_element_type=f32)     # (5, 80)

    # fc1 + ReLU: contraction over the 400 features split across the 5 spatial
    # rows; wf1 was pre-permuted so row h of `a` hits weight slab wf1_ref[h].
    f1 = bf1_ref[...]
    for h in range(5):
        f1 = f1 + jnp.dot(a[h:h + 1, :], wf1_ref[h],
                          preferred_element_type=f32)
    f1 = jnp.maximum(f1, 0.0)                                 # (1, 120)
    # TODO(synk): nn.Dropout(p=0.5) implemented as eval-mode identity
    # (training path would need pltpu.prng_seed / prng_random_bits masking).

    f2 = jnp.maximum(
        jnp.dot(f1, wf2_ref[...], preferred_element_type=f32) + bf2_ref[...],
        0.0)                                                  # (1, 84)
    # NOTE: the PyTorch source has `self.dropout2(self(output))` (recursive
    # typo); implemented as the intended `self.dropout2(output)` (identity).

    f3 = jnp.dot(f2, wf3_ref[...], preferred_element_type=f32) + bf3_ref[...]
    out_ref[0] = f3.astype(out_ref.dtype)                     # (1, 10)


# ----------------------------------------------------------------------------
# One-time weight preprocessing (PyTorch layout -> fused-kernel layout)
# ----------------------------------------------------------------------------
def _band(w_taps_ock, n_in_w, n_out_w):
    """Banded conv-weight matrix for one kernel-row tap.

    w_taps_ock: (Cout, Cin, k) weights w[o, c, dj] for a fixed di.
    Returns (Cin*n_in_w, Cout*n_out_w) with
      band[c*n_in_w + w, o*n_out_w + j] = w[o, c, w-j]  if 0 <= w-j < k else 0,
    so (rows @ band)[i, o*n_out_w + j] = sum_{c,dj} rows[i, c*n_in_w + j+dj] * w[o,c,dj].
    """
    cout, cin, k = w_taps_ock.shape
    t = jnp.arange(n_in_w)[:, None] - jnp.arange(n_out_w)[None, :]   # w - j
    valid = (t >= 0) & (t < k)
    vals = w_taps_ock[:, :, jnp.clip(t, 0, k - 1)]                   # (Co,Ci,W,J)
    vals = jnp.where(valid[None, None], vals, 0.0)
    vals = jnp.transpose(vals, (1, 2, 0, 3))                         # (Ci,W,Co,J)
    return vals.reshape(cin * n_in_w, cout * n_out_w).astype(jnp.float32)


def _row_decimation(n_out, n_in):
    """(n_out, n_in) 0/1 matrix picking rows 0, 2, 4, ..."""
    return (jnp.arange(n_in)[None, :]
            == 2 * jnp.arange(n_out)[:, None]).astype(jnp.float32)


def _col_decimation(n_groups, group_in, group_out, n_in_cols):
    """(n_in_cols, n_groups*group_out) 0/1 matrix picking col g*group_in + 2*j."""
    rows = jnp.arange(n_in_cols)[:, None]
    cols = jnp.arange(n_groups * group_out)[None, :]
    target = (cols // group_out) * group_in + 2 * (cols % group_out)
    return (rows == target).astype(jnp.float32)


def prepare_params(params):
    """Convert PyTorch-layout params into the fused-kernel operand set (once)."""
    w1, b1 = params["w1"], params["b1"]          # (6,1,5,5), (6,)
    w2, b2 = params["w2"], params["b2"]          # (16,6,5,5), (16,)

    b1w = jnp.stack([_band(w1[:, :, di, :], 32, 28) for di in range(5)])  # (5,32,168)
    b2w = jnp.stack([_band(w2[:, :, di, :], 14, 10) for di in range(5)])  # (5,84,160)
    bias1 = jnp.repeat(b1, 28).reshape(1, 168).astype(jnp.float32)
    bias2 = jnp.repeat(b2, 10).reshape(1, 160).astype(jnp.float32)

    # fc1: PyTorch flatten index is c2*25 + h*5 + w; kernel row h of pool2 has
    # columns c2*5 + w  ->  permute wf1 to (h, c2*5+w, out) = (5, 80, 120).
    wf1p = jnp.transpose(params["wf1"].reshape(120, 16, 5, 5),
                         (2, 1, 3, 0)).reshape(5, 80, 120).astype(jnp.float32)

    return {
        "b1w": b1w, "bias1": bias1,
        "b2w": b2w, "bias2": bias2,
        "rp1": _row_decimation(14, 27), "cp1": _col_decimation(6, 28, 14, 167),
        "rp2": _row_decimation(5, 9),   "cp2": _col_decimation(16, 10, 5, 159),
        "wf1p": wf1p,
        "bf1": params["bf1"].reshape(1, 120).astype(jnp.float32),
        "wf2t": params["wf2"].T.astype(jnp.float32),
        "bf2": params["bf2"].reshape(1, 84).astype(jnp.float32),
        "wf3t": params["wf3"].T.astype(jnp.float32),
        "bf3": params["bf3"].reshape(1, 10).astype(jnp.float32),
    }


# ----------------------------------------------------------------------------
# Forward wrapper: single pallas_call, grid over batch.
# ----------------------------------------------------------------------------
def _full_block(shape):
    nd = len(shape)
    return pl.BlockSpec(shape, lambda b, _nd=nd: (0,) * _nd)


def lenet5_forward(img_nchw, prepped):
    """img_nchw: (B, 1, 32, 32) float -> (B, 10) logits."""
    B = img_nchw.shape[0]
    x = img_nchw.reshape(B, 32, 32).astype(jnp.float32)

    weights = (prepped["b1w"], prepped["bias1"], prepped["b2w"], prepped["bias2"],
               prepped["rp1"], prepped["cp1"], prepped["rp2"], prepped["cp2"],
               prepped["wf1p"], prepped["bf1"], prepped["wf2t"], prepped["bf2"],
               prepped["wf3t"], prepped["bf3"])

    in_specs = [pl.BlockSpec((1, 32, 32), lambda b: (b, 0, 0))]
    in_specs += [_full_block(w.shape) for w in weights]

    out = pl.pallas_call(
        _lenet5_kernel,
        out_shape=jax.ShapeDtypeStruct((B, 1, 10), jnp.float32),
        grid=(B,),
        in_specs=in_specs,
        out_specs=pl.BlockSpec((1, 1, 10), lambda b: (b, 0, 0)),
        compiler_params=pltpu.CompilerParams(
            dimension_semantics=("parallel",)),
    )(x, *weights)
    return out.reshape(B, 10)


# ----------------------------------------------------------------------------
# Pure-JAX reference (independent implementation, mirrors the PyTorch module)
# ----------------------------------------------------------------------------
def lenet5_reference(img, params):
    dn = ("NCHW", "OIHW", "NCHW")
    y = jax.lax.conv_general_dilated(img.astype(jnp.float32), params["w1"],
                                     (1, 1), "VALID", dimension_numbers=dn)
    y = jax.nn.relu(y + params["b1"][None, :, None, None])
    y = jax.lax.reduce_window(y, -jnp.inf, jax.lax.max,
                              (1, 1, 2, 2), (1, 1, 2, 2), "VALID")
    y = jax.lax.conv_general_dilated(y, params["w2"], (1, 1), "VALID",
                                     dimension_numbers=dn)
    y = jax.nn.relu(y + params["b2"][None, :, None, None])
    y = jax.lax.reduce_window(y, -jnp.inf, jax.lax.max,
                              (1, 1, 2, 2), (1, 1, 2, 2), "VALID")
    y = y.reshape(y.shape[0], -1)
    y = jax.nn.relu(y @ params["wf1"].T + params["bf1"])
    y = jax.nn.relu(y @ params["wf2"].T + params["bf2"])
    return y @ params["wf3"].T + params["bf3"]


# ----------------------------------------------------------------------------
# Deterministic parameter init (shapes from the module's __init__)
# ----------------------------------------------------------------------------
def init_params(key):
    def uinit(k, shape, fan_in):
        bound = 1.0 / jnp.sqrt(float(fan_in))
        return jax.random.uniform(k, shape, jnp.float32, -bound, bound)

    ks = jax.random.split(key, 10)
    return {
        "w1": uinit(ks[0], (6, 1, 5, 5), 1 * 25),
        "b1": uinit(ks[1], (6,), 1 * 25),
        "w2": uinit(ks[2], (16, 6, 5, 5), 6 * 25),
        "b2": uinit(ks[3], (16,), 6 * 25),
        "wf1": uinit(ks[4], (120, 400), 400),
        "bf1": uinit(ks[5], (120,), 400),
        "wf2": uinit(ks[6], (84, 120), 120),
        "bf2": uinit(ks[7], (84,), 120),
        "wf3": uinit(ks[8], (10, 84), 84),
        "bf3": uinit(ks[9], (10,), 84),
    }


if __name__ == "__main__":
    key = jax.random.PRNGKey(0)
    pkey, xkey = jax.random.split(key)
    params = init_params(pkey)
    prepped = prepare_params(params)          # one-time weight preprocessing

    # LeNet5 requires 32x32 spatial input so that pool2 output is 16*5*5 = 400.
    img = jax.random.normal(xkey, (2, 1, 32, 32), dtype=jnp.float32)

    out = jax.jit(lenet5_forward)(img, prepped)
    out = jax.block_until_ready(out)
    assert out.shape == (2, 10), out.shape

    # Sanity-check the fused kernel against an independent XLA reference.
    ref = lenet5_reference(img, params)
    err = float(jnp.max(jnp.abs(out - ref)))
    assert err < 1e-1, f"kernel/reference mismatch: max abs err = {err}"

    print("KERNEL_OK")
</pallas_src>

<mosaic_0001>
module attributes {stable_mosaic.version = 11 : i64} {
  func.func @_lenet5_kernel(%arg0: i32, %arg1: memref<1x32x32xf32, #tpu.memory_space<vmem>>, %arg2: memref<5x32x168xf32, #tpu.memory_space<vmem>>, %arg3: memref<1x168xf32, #tpu.memory_space<vmem>>, %arg4: memref<5x84x160xf32, #tpu.memory_space<vmem>>, %arg5: memref<1x160xf32, #tpu.memory_space<vmem>>, %arg6: memref<14x27xf32, #tpu.memory_space<vmem>>, %arg7: memref<167x84xf32, #tpu.memory_space<vmem>>, %arg8: memref<5x9xf32, #tpu.memory_space<vmem>>, %arg9: memref<159x80xf32, #tpu.memory_space<vmem>>, %arg10: memref<5x80x120xf32, #tpu.memory_space<vmem>>, %arg11: memref<1x120xf32, #tpu.memory_space<vmem>>, %arg12: memref<120x84xf32, #tpu.memory_space<vmem>>, %arg13: memref<1x84xf32, #tpu.memory_space<vmem>>, %arg14: memref<84x10xf32, #tpu.memory_space<vmem>>, %arg15: memref<1x10xf32, #tpu.memory_space<vmem>>, %arg16: memref<1x1x10xf32, #tpu.memory_space<vmem>>) attributes {dimension_semantics = [#tpu.dimension_semantics<parallel>], iteration_bounds = array<i64: 2>, scalar_prefetch = 0 : i64, scratch_operands = 0 : i64, tpu.core_type = #tpu.core_type<tc>, window_params = [{transform_indices = @transform_0, window_bounds = array<i64: 1, 32, 32>}, {pipeline_mode = #tpu.pipeline_mode<synchronous>, transform_indices = @transform_1, window_bounds = array<i64: 5, 32, 168>}, {pipeline_mode = #tpu.pipeline_mode<synchronous>, transform_indices = @transform_2, window_bounds = array<i64: 1, 168>}, {pipeline_mode = #tpu.pipeline_mode<synchronous>, transform_indices = @transform_3, window_bounds = array<i64: 5, 84, 160>}, {pipeline_mode = #tpu.pipeline_mode<synchronous>, transform_indices = @transform_4, window_bounds = array<i64: 1, 160>}, {pipeline_mode = #tpu.pipeline_mode<synchronous>, transform_indices = @transform_5, window_bounds = array<i64: 14, 27>}, {pipeline_mode = #tpu.pipeline_mode<synchronous>, transform_indices = @transform_6, window_bounds = array<i64: 167, 84>}, {pipeline_mode = #tpu.pipeline_mode<synchronous>, transform_indices = @transform_7, window_bounds = array<i64: 5, 9>}, {pipeline_mode = #tpu.pipeline_mode<synchronous>, transform_indices = @transform_8, window_bounds = array<i64: 159, 80>}, {pipeline_mode = #tpu.pipeline_mode<synchronous>, transform_indices = @transform_9, window_bounds = array<i64: 5, 80, 120>}, {pipeline_mode = #tpu.pipeline_mode<synchronous>, transform_indices = @transform_10, window_bounds = array<i64: 1, 120>}, {pipeline_mode = #tpu.pipeline_mode<synchronous>, transform_indices = @transform_11, window_bounds = array<i64: 120, 84>}, {pipeline_mode = #tpu.pipeline_mode<synchronous>, transform_indices = @transform_12, window_bounds = array<i64: 1, 84>}, {pipeline_mode = #tpu.pipeline_mode<synchronous>, transform_indices = @transform_13, window_bounds = array<i64: 84, 10>}, {pipeline_mode = #tpu.pipeline_mode<synchronous>, transform_indices = @transform_14, window_bounds = array<i64: 1, 10>}, {transform_indices = @transform_15, window_bounds = array<i64: 1, 1, 10>}]} {
    %c0 = arith.constant 0 : index
    %c0_0 = arith.constant 0 : index
    %c0_1 = arith.constant 0 : index
    %0 = vector.load %arg1[%c0, %c0_0, %c0_1] : memref<1x32x32xf32, #tpu.memory_space<vmem>>, vector<1x32x32xf32>
    %1 = vector.shape_cast %0 : vector<1x32x32xf32> to vector<32x32xf32>
    %cst = arith.constant 0.000000e+00 : f32
    %2 = vector.broadcast %cst : f32 to vector<28x168xf32>
    %3 = vector.extract_strided_slice %1 {offsets = [0, 0], sizes = [28, 32], strides = [1, 1]} : vector<32x32xf32> to vector<28x32xf32>
    %c0_2 = arith.constant 0 : index
    %c0_3 = arith.constant 0 : index
    %c0_4 = arith.constant 0 : index
    %4 = vector.load %arg2[%c0_2, %c0_3, %c0_4] : memref<5x32x168xf32, #tpu.memory_space<vmem>>, vector<1x32x168xf32>
    %5 = vector.shape_cast %4 : vector<1x32x168xf32> to vector<32x168xf32>
    %cst_5 = arith.constant dense<0.000000e+00> : vector<28x168xf32>
    %6 = tpu.matmul %3, %5, %cst_5 {dimension_numbers = #tpu.dot_dimension_numbers<[1], [0], [0], [1], [0, 0, 1, 1], [], []>} : vector<28x32xf32>, vector<32x168xf32>, vector<28x168xf32> -> vector<28x168xf32>
    %7 = arith.addf %2, %6 : vector<28x168xf32>
    %8 = vector.extract_strided_slice %1 {offsets = [1, 0], sizes = [28, 32], strides = [1, 1]} : vector<32x32xf32> to vector<28x32xf32>
    %c1 = arith.constant 1 : index
    %c0_6 = arith.constant 0 : index
    %c0_7 = arith.constant 0 : index
    %9 = vector.load %arg2[%c1, %c0_6, %c0_7] : memref<5x32x168xf32, #tpu.memory_space<vmem>>, vector<1x32x168xf32>
    %10 = vector.shape_cast %9 : vector<1x32x168xf32> to vector<32x168xf32>
    %cst_8 = arith.constant dense<0.000000e+00> : vector<28x168xf32>
    %11 = tpu.matmul %8, %10, %cst_8 {dimension_numbers = #tpu.dot_dimension_numbers<[1], [0], [0], [1], [0, 0, 1, 1], [], []>} : vector<28x32xf32>, vector<32x168xf32>, vector<28x168xf32> -> vector<28x168xf32>
    %12 = arith.addf %7, %11 : vector<28x168xf32>
    %13 = vector.extract_strided_slice %1 {offsets = [2, 0], sizes = [28, 32], strides = [1, 1]} : vector<32x32xf32> to vector<28x32xf32>
    %c2 = arith.constant 2 : index
    %c0_9 = arith.constant 0 : index
    %c0_10 = arith.constant 0 : index
    %14 = vector.load %arg2[%c2, %c0_9, %c0_10] : memref<5x32x168xf32, #tpu.memory_space<vmem>>, vector<1x32x168xf32>
    %15 = vector.shape_cast %14 : vector<1x32x168xf32> to vector<32x168xf32>
    %cst_11 = arith.constant dense<0.000000e+00> : vector<28x168xf32>
    %16 = tpu.matmul %13, %15, %cst_11 {dimension_numbers = #tpu.dot_dimension_numbers<[1], [0], [0], [1], [0, 0, 1, 1], [], []>} : vector<28x32xf32>, vector<32x168xf32>, vector<28x168xf32> -> vector<28x168xf32>
    %17 = arith.addf %12, %16 : vector<28x168xf32>
    %18 = vector.extract_strided_slice %1 {offsets = [3, 0], sizes = [28, 32], strides = [1, 1]} : vector<32x32xf32> to vector<28x32xf32>
    %c3 = arith.constant 3 : index
    %c0_12 = arith.constant 0 : index
    %c0_13 = arith.constant 0 : index
    %19 = vector.load %arg2[%c3, %c0_12, %c0_13] : memref<5x32x168xf32, #tpu.memory_space<vmem>>, vector<1x32x168xf32>
    %20 = vector.shape_cast %19 : vector<1x32x168xf32> to vector<32x168xf32>
    %cst_14 = arith.constant dense<0.000000e+00> : vector<28x168xf32>
    %21 = tpu.matmul %18, %20, %cst_14 {dimension_numbers = #tpu.dot_dimension_numbers<[1], [0], [0], [1], [0, 0, 1, 1], [], []>} : vector<28x32xf32>, vector<32x168xf32>, vector<28x168xf32> -> vector<28x168xf32>
    %22 = arith.addf %17, %21 : vector<28x168xf32>
    %23 = vector.extract_strided_slice %1 {offsets = [4, 0], sizes = [28, 32], strides = [1, 1]} : vector<32x32xf32> to vector<28x32xf32>
    %c4 = arith.constant 4 : index
    %c0_15 = arith.constant 0 : index
    %c0_16 = arith.constant 0 : index
    %24 = vector.load %arg2[%c4, %c0_15, %c0_16] : memref<5x32x168xf32, #tpu.memory_space<vmem>>, vector<1x32x168xf32>
    %25 = vector.shape_cast %24 : vector<1x32x168xf32> to vector<32x168xf32>
    %cst_17 = arith.constant dense<0.000000e+00> : vector<28x168xf32>
    %26 = tpu.matmul %23, %25, %cst_17 {dimension_numbers = #tpu.dot_dimension_numbers<[1], [0], [0], [1], [0, 0, 1, 1], [], []>} : vector<28x32xf32>, vector<32x168xf32>, vector<28x168xf32> -> vector<28x168xf32>
    %27 = arith.addf %22, %26 : vector<28x168xf32>
    %c0_18 = arith.constant 0 : index
    %c0_19 = arith.constant 0 : index
    %28 = vector.load %arg3[%c0_18, %c0_19] : memref<1x168xf32, #tpu.memory_space<vmem>>, vector<1x168xf32>
    %29 = vector.broadcast %28 : vector<1x168xf32> to vector<28x168xf32>
    %30 = arith.addf %27, %29 : vector<28x168xf32>
    %cst_20 = arith.constant 0.000000e+00 : f32
    %31 = vector.broadcast %cst_20 : f32 to vector<28x168xf32>
    %32 = arith.maximumf %30, %31 : vector<28x168xf32>
    %33 = vector.extract_strided_slice %32 {offsets = [0, 0], sizes = [27, 168], strides = [1, 1]} : vector<28x168xf32> to vector<27x168xf32>
    %34 = vector.extract_strided_slice %32 {offsets = [1, 0], sizes = [27, 168], strides = [1, 1]} : vector<28x168xf32> to vector<27x168xf32>
    %35 = arith.maximumf %33, %34 : vector<27x168xf32>
    %c0_21 = arith.constant 0 : index
    %c0_22 = arith.constant 0 : index
    %36 = vector.load %arg6[%c0_21, %c0_22] : memref<14x27xf32, #tpu.memory_space<vmem>>, vector<14x27xf32>
    %cst_23 = arith.constant dense<0.000000e+00> : vector<14x168xf32>
    %37 = tpu.matmul %36, %35, %cst_23 {dimension_numbers = #tpu.dot_dimension_numbers<[1], [0], [0], [1], [0, 0, 1, 1], [], []>} : vector<14x27xf32>, vector<27x168xf32>, vector<14x168xf32> -> vector<14x168xf32>
    %38 = vector.extract_strided_slice %37 {offsets = [0, 0], sizes = [14, 167], strides = [1, 1]} : vector<14x168xf32> to vector<14x167xf32>
    %39 = vector.extract_strided_slice %37 {offsets = [0, 1], sizes = [14, 167], strides = [1, 1]} : vector<14x168xf32> to vector<14x167xf32>
    %40 = arith.maximumf %38, %39 : vector<14x167xf32>
    %c0_24 = arith.constant 0 : index
    %c0_25 = arith.constant 0 : index
    %41 = vector.load %arg7[%c0_24, %c0_25] : memref<167x84xf32, #tpu.memory_space<vmem>>, vector<167x84xf32>
    %cst_26 = arith.constant dense<0.000000e+00> : vector<14x84xf32>
    %42 = tpu.matmul %40, %41, %cst_26 {dimension_numbers = #tpu.dot_dimension_numbers<[1], [0], [0], [1], [0, 0, 1, 1], [], []>} : vector<14x167xf32>, vector<167x84xf32>, vector<14x84xf32> -> vector<14x84xf32>
    %cst_27 = arith.constant 0.000000e+00 : f32
    %43 = vector.broadcast %cst_27 : f32 to vector<10x160xf32>
    %44 = vector.extract_strided_slice %42 {offsets = [0, 0], sizes = [10, 84], strides = [1, 1]} : vector<14x84xf32> to vector<10x84xf32>
    %c0_28 = arith.constant 0 : index
    %c0_29 = arith.constant 0 : index
    %c0_30 = arith.constant 0 : index
    %45 = vector.load %arg4[%c0_28, %c0_29, %c0_30] : memref<5x84x160xf32, #tpu.memory_space<vmem>>, vector<1x84x160xf32>
    %46 = vector.shape_cast %45 : vector<1x84x160xf32> to vector<84x160xf32>
    %cst_31 = arith.constant dense<0.000000e+00> : vector<10x160xf32>
    %47 = tpu.matmul %44, %46, %cst_31 {dimension_numbers = #tpu.dot_dimension_numbers<[1], [0], [0], [1], [0, 0, 1, 1], [], []>} : vector<10x84xf32>, vector<84x160xf32>, vector<10x160xf32> -> vector<10x160xf32>
    %48 = arith.addf %43, %47 : vector<10x160xf32>
    %49 = vector.extract_strided_slice %42 {offsets = [1, 0], sizes = [10, 84], strides = [1, 1]} : vector<14x84xf32> to vector<10x84xf32>
    %c1_32 = arith.constant 1 : index
    %c0_33 = arith.constant 0 : index
    %c0_34 = arith.constant 0 : index
    %50 = vector.load %arg4[%c1_32, %c0_33, %c0_34] : memref<5x84x160xf32, #tpu.memory_space<vmem>>, vector<1x84x160xf32>
    %51 = vector.shape_cast %50 : vector<1x84x160xf32> to vector<84x160xf32>
    %cst_35 = arith.constant dense<0.000000e+00> : vector<10x160xf32>
    %52 = tpu.matmul %49, %51, %cst_35 {dimension_numbers = #tpu.dot_dimension_numbers<[1], [0], [0], [1], [0, 0, 1, 1], [], []>} : vector<10x84xf32>, vector<84x160xf32>, vector<10x160xf32> -> vector<10x160xf32>
    %53 = arith.addf %48, %52 : vector<10x160xf32>
    %54 = vector.extract_strided_slice %42 {offsets = [2, 0], sizes = [10, 84], strides = [1, 1]} : vector<14x84xf32> to vector<10x84xf32>
    %c2_36 = arith.constant 2 : index
    %c0_37 = arith.constant 0 : index
    %c0_38 = arith.constant 0 : index
    %55 = vector.load %arg4[%c2_36, %c0_37, %c0_38] : memref<5x84x160xf32, #tpu.memory_space<vmem>>, vector<1x84x160xf32>
    %56 = vector.shape_cast %55 : vector<1x84x160xf32> to vector<84x160xf32>
    %cst_39 = arith.constant dense<0.000000e+00> : vector<10x160xf32>
    %57 = tpu.matmul %54, %56, %cst_39 {dimension_numbers = #tpu.dot_dimension_numbers<[1], [0], [0], [1], [0, 0, 1, 1], [], []>} : vector<10x84xf32>, vector<84x160xf32>, vector<10x160xf32> -> vector<10x160xf32>
    %58 = arith.addf %53, %57 : vector<10x160xf32>
    %59 = vector.extract_strided_slice %42 {offsets = [3, 0], sizes = [10, 84], strides = [1, 1]} : vector<14x84xf32> to vector<10x84xf32>
    %c3_40 = arith.constant 3 : index
    %c0_41 = arith.constant 0 : index
    %c0_42 = arith.constant 0 : index
    %60 = vector.load %arg4[%c3_40, %c0_41, %c0_42] : memref<5x84x160xf32, #tpu.memory_space<vmem>>, vector<1x84x160xf32>
    %61 = vector.shape_cast %60 : vector<1x84x160xf32> to vector<84x160xf32>
    %cst_43 = arith.constant dense<0.000000e+00> : vector<10x160xf32>
    %62 = tpu.matmul %59, %61, %cst_43 {dimension_numbers = #tpu.dot_dimension_numbers<[1], [0], [0], [1], [0, 0, 1, 1], [], []>} : vector<10x84xf32>, vector<84x160xf32>, vector<10x160xf32> -> vector<10x160xf32>
    %63 = arith.addf %58, %62 : vector<10x160xf32>
    %64 = vector.extract_strided_slice %42 {offsets = [4, 0], sizes = [10, 84], strides = [1, 1]} : vector<14x84xf32> to vector<10x84xf32>
    %c4_44 = arith.constant 4 : index
    %c0_45 = arith.constant 0 : index
    %c0_46 = arith.constant 0 : index
    %65 = vector.load %arg4[%c4_44, %c0_45, %c0_46] : memref<5x84x160xf32, #tpu.memory_space<vmem>>, vector<1x84x160xf32>
    %66 = vector.shape_cast %65 : vector<1x84x160xf32> to vector<84x160xf32>
    %cst_47 = arith.constant dense<0.000000e+00> : vector<10x160xf32>
    %67 = tpu.matmul %64, %66, %cst_47 {dimension_numbers = #tpu.dot_dimension_numbers<[1], [0], [0], [1], [0, 0, 1, 1], [], []>} : vector<10x84xf32>, vector<84x160xf32>, vector<10x160xf32> -> vector<10x160xf32>
    %68 = arith.addf %63, %67 : vector<10x160xf32>
    %c0_48 = arith.constant 0 : index
    %c0_49 = arith.constant 0 : index
    %69 = vector.load %arg5[%c0_48, %c0_49] : memref<1x160xf32, #tpu.memory_space<vmem>>, vector<1x160xf32>
    %70 = vector.broadcast %69 : vector<1x160xf32> to vector<10x160xf32>
    %71 = arith.addf %68, %70 : vector<10x160xf32>
    %cst_50 = arith.constant 0.000000e+00 : f32
    %72 = vector.broadcast %cst_50 : f32 to vector<10x160xf32>
    %73 = arith.maximumf %71, %72 : vector<10x160xf32>
    %74 = vector.extract_strided_slice %73 {offsets = [0, 0], sizes = [9, 160], strides = [1, 1]} : vector<10x160xf32> to vector<9x160xf32>
    %75 = vector.extract_strided_slice %73 {offsets = [1, 0], sizes = [9, 160], strides = [1, 1]} : vector<10x160xf32> to vector<9x160xf32>
    %76 = arith.maximumf %74, %75 : vector<9x160xf32>
    %c0_51 = arith.constant 0 : index
    %c0_52 = arith.constant 0 : index
    %77 = vector.load %arg8[%c0_51, %c0_52] : memref<5x9xf32, #tpu.memory_space<vmem>>, vector<5x9xf32>
    %cst_53 = arith.constant dense<0.000000e+00> : vector<5x160xf32>
    %78 = tpu.matmul %77, %76, %cst_53 {dimension_numbers = #tpu.dot_dimension_numbers<[1], [0], [0], [1], [0, 0, 1, 1], [], []>} : vector<5x9xf32>, vector<9x160xf32>, vector<5x160xf32> -> vector<5x160xf32>
    %79 = vector.extract_strided_slice %78 {offsets = [0, 0], sizes = [5, 159], strides = [1, 1]} : vector<5x160xf32> to vector<5x159xf32>
    %80 = vector.extract_strided_slice %78 {offsets = [0, 1], sizes = [5, 159], strides = [1, 1]} : vector<5x160xf32> to vector<5x159xf32>
    %81 = arith.maximumf %79, %80 : vector<5x159xf32>
    %c0_54 = arith.constant 0 : index
    %c0_55 = arith.constant 0 : index
    %82 = vector.load %arg9[%c0_54, %c0_55] : memref<159x80xf32, #tpu.memory_space<vmem>>, vector<159x80xf32>
    %cst_56 = arith.constant dense<0.000000e+00> : vector<5x80xf32>
    %83 = tpu.matmul %81, %82, %cst_56 {dimension_numbers = #tpu.dot_dimension_numbers<[1], [0], [0], [1], [0, 0, 1, 1], [], []>} : vector<5x159xf32>, vector<159x80xf32>, vector<5x80xf32> -> vector<5x80xf32>
    %c0_57 = arith.constant 0 : index
    %c0_58 = arith.constant 0 : index
    %84 = vector.load %arg11[%c0_57, %c0_58] : memref<1x120xf32, #tpu.memory_space<vmem>>, vector<1x120xf32>
    %85 = vector.extract_strided_slice %83 {offsets = [0, 0], sizes = [1, 80], strides = [1, 1]} : vector<5x80xf32> to vector<1x80xf32>
    %c0_59 = arith.constant 0 : index
    %c0_60 = arith.constant 0 : index
    %c0_61 = arith.constant 0 : index
    %86 = vector.load %arg10[%c0_59, %c0_60, %c0_61] : memref<5x80x120xf32, #tpu.memory_space<vmem>>, vector<1x80x120xf32>
    %87 = vector.shape_cast %86 : vector<1x80x120xf32> to vector<80x120xf32>
    %cst_62 = arith.constant dense<0.000000e+00> : vector<1x120xf32>
    %88 = tpu.matmul %85, %87, %cst_62 {dimension_numbers = #tpu.dot_dimension_numbers<[1], [0], [0], [1], [0, 0, 1, 1], [], []>} : vector<1x80xf32>, vector<80x120xf32>, vector<1x120xf32> -> vector<1x120xf32>
    %89 = arith.addf %84, %88 : vector<1x120xf32>
    %90 = vector.extract_strided_slice %83 {offsets = [1, 0], sizes = [1, 80], strides = [1, 1]} : vector<5x80xf32> to vector<1x80xf32>
    %c1_63 = arith.constant 1 : index
    %c0_64 = arith.constant 0 : index
    %c0_65 = arith.constant 0 : index
    %91 = vector.load %arg10[%c1_63, %c0_64, %c0_65] : memref<5x80x120xf32, #tpu.memory_space<vmem>>, vector<1x80x120xf32>
    %92 = vector.shape_cast %91 : vector<1x80x120xf32> to vector<80x120xf32>
    %cst_66 = arith.constant dense<0.000000e+00> : vector<1x120xf32>
    %93 = tpu.matmul %90, %92, %cst_66 {dimension_numbers = #tpu.dot_dimension_numbers<[1], [0], [0], [1], [0, 0, 1, 1], [], []>} : vector<1x80xf32>, vector<80x120xf32>, vector<1x120xf32> -> vector<1x120xf32>
    %94 = arith.addf %89, %93 : vector<1x120xf32>
    %95 = vector.extract_strided_slice %83 {offsets = [2, 0], sizes = [1, 80], strides = [1, 1]} : vector<5x80xf32> to vector<1x80xf32>
    %c2_67 = arith.constant 2 : index
    %c0_68 = arith.constant 0 : index
    %c0_69 = arith.constant 0 : index
    %96 = vector.load %arg10[%c2_67, %c0_68, %c0_69] : memref<5x80x120xf32, #tpu.memory_space<vmem>>, vector<1x80x120xf32>
    %97 = vector.shape_cast %96 : vector<1x80x120xf32> to vector<80x120xf32>
    %cst_70 = arith.constant dense<0.000000e+00> : vector<1x120xf32>
    %98 = tpu.matmul %95, %97, %cst_70 {dimension_numbers = #tpu.dot_dimension_numbers<[1], [0], [0], [1], [0, 0, 1, 1], [], []>} : vector<1x80xf32>, vector<80x120xf32>, vector<1x120xf32> -> vector<1x120xf32>
    %99 = arith.addf %94, %98 : vector<1x120xf32>
    %100 = vector.extract_strided_slice %83 {offsets = [3, 0], sizes = [1, 80], strides = [1, 1]} : vector<5x80xf32> to vector<1x80xf32>
    %c3_71 = arith.constant 3 : index
    %c0_72 = arith.constant 0 : index
    %c0_73 = arith.constant 0 : index
    %101 = vector.load %arg10[%c3_71, %c0_72, %c0_73] : memref<5x80x120xf32, #tpu.memory_space<vmem>>, vector<1x80x120xf32>
    %102 = vector.shape_cast %101 : vector<1x80x120xf32> to vector<80x120xf32>
    %cst_74 = arith.constant dense<0.000000e+00> : vector<1x120xf32>
    %103 = tpu.matmul %100, %102, %cst_74 {dimension_numbers = #tpu.dot_dimension_numbers<[1], [0], [0], [1], [0, 0, 1, 1], [], []>} : vector<1x80xf32>, vector<80x120xf32>, vector<1x120xf32> -> vector<1x120xf32>
    %104 = arith.addf %99, %103 : vector<1x120xf32>
    %105 = vector.extract_strided_slice %83 {offsets = [4, 0], sizes = [1, 80], strides = [1, 1]} : vector<5x80xf32> to vector<1x80xf32>
    %c4_75 = arith.constant 4 : index
    %c0_76 = arith.constant 0 : index
    %c0_77 = arith.constant 0 : index
    %106 = vector.load %arg10[%c4_75, %c0_76, %c0_77] : memref<5x80x120xf32, #tpu.memory_space<vmem>>, vector<1x80x120xf32>
    %107 = vector.shape_cast %106 : vector<1x80x120xf32> to vector<80x120xf32>
    %cst_78 = arith.constant dense<0.000000e+00> : vector<1x120xf32>
    %108 = tpu.matmul %105, %107, %cst_78 {dimension_numbers = #tpu.dot_dimension_numbers<[1], [0], [0], [1], [0, 0, 1, 1], [], []>} : vector<1x80xf32>, vector<80x120xf32>, vector<1x120xf32> -> vector<1x120xf32>
    %109 = arith.addf %104, %108 : vector<1x120xf32>
    %cst_79 = arith.constant 0.000000e+00 : f32
    %110 = vector.broadcast %cst_79 : f32 to vector<1x120xf32>
    %111 = arith.maximumf %109, %110 : vector<1x120xf32>
    %c0_80 = arith.constant 0 : index
    %c0_81 = arith.constant 0 : index
    %112 = vector.load %arg12[%c0_80, %c0_81] : memref<120x84xf32, #tpu.memory_space<vmem>>, vector<120x84xf32>
    %cst_82 = arith.constant dense<0.000000e+00> : vector<1x84xf32>
    %113 = tpu.matmul %111, %112, %cst_82 {dimension_numbers = #tpu.dot_dimension_numbers<[1], [0], [0], [1], [0, 0, 1, 1], [], []>} : vector<1x120xf32>, vector<120x84xf32>, vector<1x84xf32> -> vector<1x84xf32>
    %c0_83 = arith.constant 0 : index
    %c0_84 = arith.constant 0 : index
    %114 = vector.load %arg13[%c0_83, %c0_84] : memref<1x84xf32, #tpu.memory_space<vmem>>, vector<1x84xf32>
    %115 = arith.addf %113, %114 : vector<1x84xf32>
    %cst_85 = arith.constant 0.000000e+00 : f32
    %116 = vector.broadcast %cst_85 : f32 to vector<1x84xf32>
    %117 = arith.maximumf %115, %116 : vector<1x84xf32>
    %c0_86 = arith.constant 0 : index
    %c0_87 = arith.constant 0 : index
    %118 = vector.load %arg14[%c0_86, %c0_87] : memref<84x10xf32, #tpu.memory_space<vmem>>, vector<84x10xf32>
    %cst_88 = arith.constant dense<0.000000e+00> : vector<1x10xf32>
    %119 = tpu.matmul %117, %118, %cst_88 {dimension_numbers = #tpu.dot_dimension_numbers<[1], [0], [0], [1], [0, 0, 1, 1], [], []>} : vector<1x84xf32>, vector<84x10xf32>, vector<1x10xf32> -> vector<1x10xf32>
    %c0_89 = arith.constant 0 : index
    %c0_90 = arith.constant 0 : index
    %120 = vector.load %arg15[%c0_89, %c0_90] : memref<1x10xf32, #tpu.memory_space<vmem>>, vector<1x10xf32>
    %121 = arith.addf %119, %120 : vector<1x10xf32>
    %c0_91 = arith.constant 0 : index
    %c0_92 = arith.constant 0 : index
    %c0_93 = arith.constant 0 : index
    %122 = vector.load %arg16[%c0_91, %c0_92, %c0_93] : memref<1x1x10xf32, #tpu.memory_space<vmem>>, vector<1x1x10xf32>
    %123 = vector.shape_cast %122 : vector<1x1x10xf32> to vector<1x10xf32>
    %124 = vector.shape_cast %121 : vector<1x10xf32> to vector<1x1x10xf32>
    tpu.vector_store %arg16[%c0_91, %c0_92, %c0_93], %124 {strides = array<i32>} : memref<1x1x10xf32, #tpu.memory_space<vmem>>, vector<1x1x10xf32>,
    return
  }
  func.func @transform_0(%arg0: i32) -> (i32, i32, i32) {
    %c0_i32 = arith.constant 0 : i32
    %c0_i32_0 = arith.constant 0 : i32
    %c0_i32_1 = arith.constant 0 : i32
    return %arg0, %c0_i32, %c0_i32_0 : i32, i32, i32
  }
  func.func @transform_1(%arg0: i32) -> (i32, i32, i32) {
    %c0_i32 = arith.constant 0 : i32
    %c0_i32_0 = arith.constant 0 : i32
    %c0_i32_1 = arith.constant 0 : i32
    %c0_i32_2 = arith.constant 0 : i32
    return %c0_i32, %c0_i32_0, %c0_i32_1 : i32, i32, i32
  }
  func.func @transform_2(%arg0: i32) -> (i32, i32) {
    %c0_i32 = arith.constant 0 : i32
    %c0_i32_0 = arith.constant 0 : i32
    %c0_i32_1 = arith.constant 0 : i32
    return %c0_i32, %c0_i32_0 : i32, i32
  }
  func.func @transform_3(%arg0: i32) -> (i32, i32, i32) {
    %c0_i32 = arith.constant 0 : i32
    %c0_i32_0 = arith.constant 0 : i32
    %c0_i32_1 = arith.constant 0 : i32
    %c0_i32_2 = arith.constant 0 : i32
    return %c0_i32, %c0_i32_0, %c0_i32_1 : i32, i32, i32
  }
  func.func @transform_4(%arg0: i32) -> (i32, i32) {
    %c0_i32 = arith.constant 0 : i32
    %c0_i32_0 = arith.constant 0 : i32
    %c0_i32_1 = arith.constant 0 : i32
    return %c0_i32, %c0_i32_0 : i32, i32
  }
  func.func @transform_5(%arg0: i32) -> (i32, i32) {
    %c0_i32 = arith.constant 0 : i32
    %c0_i32_0 = arith.constant 0 : i32
    %c0_i32_1 = arith.constant 0 : i32
    return %c0_i32, %c0_i32_0 : i32, i32
  }
  func.func @transform_6(%arg0: i32) -> (i32, i32) {
    %c0_i32 = arith.constant 0 : i32
    %c0_i32_0 = arith.constant 0 : i32
    %c0_i32_1 = arith.constant 0 : i32
    return %c0_i32, %c0_i32_0 : i32, i32
  }
  func.func @transform_7(%arg0: i32) -> (i32, i32) {
    %c0_i32 = arith.constant 0 : i32
    %c0_i32_0 = arith.constant 0 : i32
    %c0_i32_1 = arith.constant 0 : i32
    return %c0_i32, %c0_i32_0 : i32, i32
  }
  func.func @transform_8(%arg0: i32) -> (i32, i32) {
    %c0_i32 = arith.constant 0 : i32
    %c0_i32_0 = arith.constant 0 : i32
    %c0_i32_1 = arith.constant 0 : i32
    return %c0_i32, %c0_i32_0 : i32, i32
  }
  func.func @transform_9(%arg0: i32) -> (i32, i32, i32) {
    %c0_i32 = arith.constant 0 : i32
    %c0_i32_0 = arith.constant 0 : i32
    %c0_i32_1 = arith.constant 0 : i32
    %c0_i32_2 = arith.constant 0 : i32
    return %c0_i32, %c0_i32_0, %c0_i32_1 : i32, i32, i32
  }
  func.func @transform_10(%arg0: i32) -> (i32, i32) {
    %c0_i32 = arith.constant 0 : i32
    %c0_i32_0 = arith.constant 0 : i32
    %c0_i32_1 = arith.constant 0 : i32
    return %c0_i32, %c0_i32_0 : i32, i32
  }
  func.func @transform_11(%arg0: i32) -> (i32, i32) {
    %c0_i32 = arith.constant 0 : i32
    %c0_i32_0 = arith.constant 0 : i32
    %c0_i32_1 = arith.constant 0 : i32
    return %c0_i32, %c0_i32_0 : i32, i32
  }
  func.func @transform_12(%arg0: i32) -> (i32, i32) {
    %c0_i32 = arith.constant 0 : i32
    %c0_i32_0 = arith.constant 0 : i32
    %c0_i32_1 = arith.constant 0 : i32
    return %c0_i32, %c0_i32_0 : i32, i32
  }
  func.func @transform_13(%arg0: i32) -> (i32, i32) {
    %c0_i32 = arith.constant 0 : i32
    %c0_i32_0 = arith.constant 0 : i32
    %c0_i32_1 = arith.constant 0 : i32
    return %c0_i32, %c0_i32_0 : i32, i32
  }
  func.func @transform_14(%arg0: i32) -> (i32, i32) {
    %c0_i32 = arith.constant 0 : i32
    %c0_i32_0 = arith.constant 0 : i32
    %c0_i32_1 = arith.constant 0 : i32
    return %c0_i32, %c0_i32_0 : i32, i32
  }
  func.func @transform_15(%arg0: i32) -> (i32, i32, i32) {
    %c0_i32 = arith.constant 0 : i32
    %c0_i32_0 = arith.constant 0 : i32
    %c0_i32_1 = arith.constant 0 : i32
    return %arg0, %c0_i32, %c0_i32_0 : i32, i32, i32
  }
}

</mosaic_0001>

<bundles_post_ra>
// kernel: lenet5_forward.1
= control target key start
LH: loop header
LB: loop body
LE: loop exit
PB: predicated region body
PF: predicated region fallthrough
CT: control target
= control target key end

     0   :  { %20 = vsyncpa [#allocation3], 0  ;;  %s4756_s0 = inlined_call_operand.vmem [shape: f32[2,32,32], index: 0, kind: input, shape index: {}]   ;;  %s4757_s1 = inlined_call_operand.vmem [shape: f32[5,32,168], index: 1, kind: input, shape index: {}]   ;;  %s4758_s2 = inlined_call_operand.vmem [shape: f32[1,168], index: 2, kind: input, shape index: {}]   ;;  %s4759_s3 = inlined_call_operand.vmem [shape: f32[5,84,160], index: 3, kind: input, shape index: {}]   ;;  %s4760_s4 = inlined_call_operand.vmem [shape: f32[1,160], index: 4, kind: input, shape index: {}]   ;;  %s4761_s5 = inlined_call_operand.vmem [shape: f32[14,27], index: 5, kind: input, shape index: {}]   ;;  %s4762_s6 = inlined_call_operand.vmem [shape: f32[167,84], index: 6, kind: input, shape index: {}]   ;;  %s4763_s7 = inlined_call_operand.vmem [shape: f32[5,9], index: 7, kind: input, shape index: {}]   ;;  %s4764_s8 = inlined_call_operand.vmem [shape: f32[159,80], index: 8, kind: input, shape index: {}]   ;;  %s4765_s9 = inlined_call_operand.vmem [shape: f32[5,80,120], index: 9, kind: input, shape index: {}]   ;;  %s4766_s10 = inlined_call_operand.vmem [shape: f32[1,120], index: 10, kind: input, shape index: {}]   ;;  %s4767_s11 = inlined_call_operand.vmem [shape: f32[120,84], index: 11, kind: input, shape index: {}]   ;;  %s4768_s12 = inlined_call_operand.vmem [shape: f32[1,84], index: 12, kind: input, shape index: {}]   ;;  %s4769_s13 = inlined_call_operand.vmem [shape: f32[84,10], index: 13, kind: input, shape index: {}]   ;;  %s4770_s14 = inlined_call_operand.vmem [shape: f32[1,10], index: 14, kind: input, shape index: {}]   ;;  %s4771_s15 = inlined_call_operand.hbm [shape: f32[2,1,10], index: 15, kind: output, shape index: {}]  }
   0x1   :  { %22 = vsyncpa [#allocation3 + $0x1], 0  ;;  %s3529_s18 = smov 0   ;;  %s3531_s19 = smov 0  }
   0x2   :  { %s3533_s20 = smov 0   ;;  %s3535_s21 = smov 0  }
   0x3 LB: > { %4778 = sst [smem:[#allocation5_spill]] %s3431_s18  ;;  %s3550_s22 = sadd.s32 4294967295, %s3443_s21   ;;  %s3443_s21 = sphi %s3535_s21, %s4789_s21   ;;  %s3439_s20 = sphi %s3533_s20, %s4794_s20   ;;  %s3435_s19 = sphi %s3531_s19, %s4793_s19   ;;  %s3431_s18 = sphi %s3529_s18, %s4792_s18  }
   0x4   : > { %4779 = sst [smem:[#allocation6_spill]] %s3439_s20  ;;  %s2855_s23 = sadd.s32 4294967294, %s3443_s21  }
   0x5   : > { %4780 = sst [smem:[#allocation7_spill]] %s3443_s21  ;;  %s3554_s24 = sadd.s32 1, %s3443_s21  }
   0x6   : > { %4781 = sst [smem:[#allocation8_spill]] %s3554_s24  ;;  %s355_s25 = sadd.s32 1, %s3439_s20 }
   0x7   : > { %s352_s26 = ssub.s32 %s3443_s21, %s3554_s24  ;;  %p365_p0 = scmp.ne.s32.totalorder %s3439_s20, %s3435_s19 }
   0x8   : > { %p353_p1 = scmp.eq.s32.totalorder %s352_s26, 0  ;;  %p366_p2 = scmp.eq.s32.totalorder %s3550_s22, 1 }
   0x9   : > { %p371_p3 = scmp.ne.s32.totalorder %s3435_s19, %s3431_s18  ;;  %p372_p4 = scmp.eq.s32.totalorder %s2855_s23, 1 }
   0xa   : > { %s3565_s27 = scalar_select %p353_p1, %s3439_s20, %s355_s25  }
   0xb   : > { %p3567_p5 = por %p366_p2, %p365_p0  ;;  %p3571_p6 = por %p372_p4, %p371_p3 }
   0xc   : > { %4782 = sst [smem:[#allocation9_spill]] %s3565_s27  ;;  %p2858_p7 = scmp.ge.s32.totalorder %s3443_s21, 1 }
   0xd   : > { %s4784_s29 = scalar_select %p3571_p6, 1, 0 }
   0xe   : > { %p440_p8 = scmp.lt.s32.totalorder %s3443_s21, 3 }
   0xf   : > { %4785 = sst [smem:[#allocation10_spill]] %s4784_s29 }
  0x10   : > { %p441_p9 = pnand %p2858_p7, %p440_p8 }
  0x11   : > { %p487_p10 = scmp.lt.s32.totalorder (!%p441_p9), %s3550_s22, 1  ;;  %s3446_s16 = smov (!%p441_p9), 127  }
  0x12   : > { %444 = sbr.rel (%p441_p9) target bundleno = 2218 (0x8aa), region = 80  ;;  %s3081_s27 = sshll.u32 (!%p441_p9), %s3550_s22, 4 }
  0x13   : > { %s4721_s17 = scalar_lea.hbm (!%p441_p9), %s4771_s15, %s3081_s27 }
  0x17   : > { %v2868_v0 = vld [vmem:[%s4757_s1 + $0x78] sm:$0xff]  ;;  %v2867_v2 = vld [vmem:[%s4757_s1 + $0x70] sm:$0xff]  ;;  %v2866_v4 = vld [vmem:[%s4757_s1 + $0x68] sm:$0xff]  ;;  %s488_s24 = scalar_select %p487_p10, %s3550_s22, 1  ;;  %vm517_vm0 = vcmask 1046528   ;;  %vm525_vm1 = vcmask 261120  }
  0x18   : > { %v503_v1 = vld [vmem:[%s4757_s1 + $0x38] sm:$0xff]  ;;  %558 = vmatprep.subr.mxu0 %v2868_v0  ;;  %v502_v3 = vld [vmem:[%s4757_s1 + $0x30] sm:$0xff]  ;;  %v501_v5 = vld [vmem:[%s4757_s1 + $0x28] sm:$0xff]  ;;  %v3445_v22 = vmov 0.0   ;;  %vm729_vm2 = vcmask 1045504   ;;  %vm851_vm3 = vcmask 1044480  }
  0x19   : > { %655 = vmatprep.subr.mxu1 %v503_v1  ;;  %559 = vmatpush1.msra.mxu0 %v2867_v2  ;;  %v2865_v6 = vld [vmem:[%s4757_s1 + $0x60] sm:$0xff]  ;;  %v2864_v8 = vld [vmem:[%s4757_s1 + $0x58] sm:$0xff]  ;;  %v2863_v10 = vld [vmem:[%s4757_s1 + $0x50] sm:$0xff]  ;;  %s3084_s30 = sshll.u32 %s488_s24, 5  ;;  %vm973_vm4 = vcmask 1043456   ;;  %vm1161_vm5 = vcmask 1042432  }
  0x1a   : > { %656 = vmatpush1.msra.mxu1 %v502_v3  ;;  %v500_v7 = vld [vmem:[%s4757_s1 + $0x20] sm:$0xff]  ;;  %560 = vmatprep.subr.mxu0 %v2866_v4  ;;  %v499_v9 = vld [vmem:[%s4757_s1 + $0x18] sm:$0xff]  ;;  %v498_v11 = vld [vmem:[%s4757_s1 + $0x10] sm:$0xff]  ;;  %s491_s25 = scalar_lea.vmem %s4756_s0, %s3084_s30  ;;  %vm1154_vm6 = vcmask 220160   ;;  %vm1257_vm7 = vcmask 1039360   ;;  %vm1289_vm8 = vcmask 318464  }
  0x1b   : > { %657 = vmatprep.subr.mxu1 %v501_v5  ;;  %561 = vmatpush1.msra.mxu0 %v2865_v6  ;;  %v2862_v12 = vld [vmem:[%s4757_s1 + $0x48] sm:$0xff]  ;;  %v2861_v14 = vld [vmem:[%s4757_s1 + $0x40] sm:$0xff]  ;;  %v3634_v18 = vld [vmem:[%s491_s25 + $0x10] sm:$0xff]  ;;  %vm1424_vm9 = vcmask 687104   ;;  %vm1993_vm10 = vcmask 1040384   ;;  %vm1989_vm11 = vcmask 72704  }
  0x1c   : > { %658 = vmatpush1.msra.mxu1 %v500_v7  ;;  %v497_v13 = vld [vmem:[%s4757_s1 + $0x8] sm:$0xff]  ;;  %562 = vmatprep.subr.mxu0 %v2864_v8  ;;  %v496_v15 = vld [vmem:[%s4757_s1] sm:$0xff]  ;;  %v521_v21 = vrot.slane %v3634_v18, 1  ;;  %v3640_v23 = vld [vmem:[%s491_s25 + $0x18] sm:$0xff]  ;;  %v733_v50 = vrot.slane %v3634_v18, 2  ;;  %v855_v51 = vrot.slane %v3634_v18, 3 }
  0x1d   : > { %659 = vmatprep.subr.mxu1 %v499_v9  ;;  %563 = vmatpush1.msra.mxu0 %v2863_v10  ;;  %v3630_v16 = vld [vmem:[%s491_s25] sm:$0xff]  ;;  %v3632_v17 = vld [vmem:[%s491_s25 + $0x8] sm:$0xff]  ;;  %v2884_v25 = vld [vmem:[%s4757_s1 + $0xb8] sm:$0xff]  ;;  %v523_v30 = vrot.slane %v3640_v23, 1  ;;  %v735_v56 = vrot.slane %v3640_v23, 2  ;;  %v857_v57 = vrot.slane %v3640_v23, 3 }
  0x1e   : > { %660 = vmatpush1.msra.mxu1 %v498_v11  ;;  %564 = vmatprep.subr.mxu0 %v2862_v12  ;;  %v518_v19 = vrot.slane %v3630_v16, 1  ;;  %v519_v20 = vrot.slane %v3632_v17, 1  ;;  %v2896_v26 = vld [vmem:[%s4757_s1 + $0xf8] sm:$0xff]  ;;  %v2883_v27 = vld [vmem:[%s4757_s1 + $0xb0] sm:$0xff]  ;;  %v2882_v31 = vld [vmem:[%s4757_s1 + $0xa8] sm:$0xff]  ;;  %v730_v40 = vrot.slane %v3630_v16, 2 }
  0x1f   : > { %661 = vmatprep.subr.mxu1 %v497_v13  ;;  %565 = vmatpush1.msra.mxu0 %v2861_v14  ;;  %v2895_v28 = vld [vmem:[%s4757_s1 + $0xf0] sm:$0xff]  ;;  %v2894_v32 = vld [vmem:[%s4757_s1 + $0xe8] sm:$0xff]  ;;  %v2881_v33 = vld [vmem:[%s4757_s1 + $0xa0] sm:$0xff]  ;;  %v524_v35 = vsel %vm517_vm0, %v521_v21, %v523_v30  ;;  %v731_v41 = vrot.slane %v3632_v17, 2  ;;  %v852_v42 = vrot.slane %v3630_v16, 3  ;;  %v853_v43 = vrot.slane %v3632_v17, 3 }
  0x20   : > { %598 = vmatprep.mubr.f32.mxu0 %v3445_v22  ;;  %662 = vmatpush1.msra.mxu1 %v496_v15  ;;  %v520_v24 = vsel %vm517_vm0, %v518_v19, %v519_v20  ;;  %v522_v29 = vsel %vm517_vm0, %v519_v20, %v521_v21  ;;  %v2893_v34 = vld [vmem:[%s4757_s1 + $0xe0] sm:$0xff]  ;;  %v2880_v36 = vld [vmem:[%s4757_s1 + $0x98] sm:$0xff]  ;;  %v2879_v38 = vld [vmem:[%s4757_s1 + $0x90] sm:$0xff]  ;;  %v736_v60 = vsel %vm729_vm2, %v733_v50, %v735_v56  ;;  %v974_v1 = vrot.slane %v3630_v16, 4  ;;  %s485_s24 = sand.u32 1, %s3435_s19   ;;  %s3448_s22 = smov [#allocation2]  }
  0x21   : > { %695 = vmatprep.mubr.f32.mxu1 %v3445_v22  ;;  %2869 = vmatmul.mubr.msk.f32.vlgmr.msra.gmra.mxu0 %vm525_vm1, %v520_v24  ;;  %v2892_v37 = vld [vmem:[%s4757_s1 + $0xd8] sm:$0xff]  ;;  %v2891_v39 = vld [vmem:[%s4757_s1 + $0xd0] sm:$0xff]  ;;  %v2878_v44 = vld [vmem:[%s4757_s1 + $0x88] sm:$0xff]  ;;  %v732_v48 = vsel %vm729_vm2, %v730_v40, %v731_v41  ;;  %v854_v49 = vsel %vm851_vm3, %v852_v42, %v853_v43  ;;  %v734_v54 = vsel %vm729_vm2, %v731_v41, %v733_v50  ;;  %v975_v2 = vrot.slane %v3632_v17, 4  ;;  %s486_s30 = scalar_lea.vmem [#allocation2], %s485_s24  ;;  %s2788_s23 = scalar_lea.sflag [#allocation3], %s485_s24 }
  0x22   : > { %2873 = vmatmul.mubr.msk.f32.vlgmr.msra.gmra.mxu1 %vm525_vm1, %v3630_v16  ;;  %604 = vmatprep.mubr.f32.mxu0 %v3445_v22  ;;  %v2877_v45 = vld [vmem:[%s4757_s1 + $0x80] sm:$0xff]  ;;  %v2890_v46 = vld [vmem:[%s4757_s1 + $0xc8] sm:$0xff]  ;;  %v2908_v52 = vld [vmem:[%s4757_s1 + $0x138] sm:$0xff]  ;;  %v856_v55 = vsel %vm851_vm3, %v853_v43, %v855_v51  ;;  %v858_v61 = vsel %vm851_vm3, %v855_v51, %v857_v57  ;;  %v977_v5 = vrot.slane %v3634_v18, 4  ;;  %v979_v7 = vrot.slane %v3640_v23, 4  ;;  %s2800_s29 = sshll.u32 %s486_s30, 4  ;;  %s2801_s29 = int_to_ptr.vmem [resolvable:$true] %s2800_s29 }
  0x23   : > { %701 = vmatprep.mubr.f32.mxu1 %v3445_v22  ;;  %769 = vmatprep.subr.mxu0 %v2884_v25  ;;  %v2889_v47 = vld [vmem:[%s4757_s1 + $0xc0] sm:$0xff]  ;;  %v2907_v53 = vld [vmem:[%s4757_s1 + $0x130] sm:$0xff]  ;;  %v2906_v58 = vld [vmem:[%s4757_s1 + $0x128] sm:$0xff]  ;;  %v976_v4 = vsel %vm973_vm4, %v974_v1, %v975_v2  ;;  %vm2102_vm12 = vcmask 252928   ;;  %vm3447_vm13 = vmmov 0   ;;  %vm2190_vm14 = vcmask 654336  }
  0x24   : > { %891 = vmatprep.subr.mxu1 %v2896_v26  ;;  %770 = vmatpush1.msra.mxu0 %v2883_v27  ;;  %v2905_v59 = vld [vmem:[%s4757_s1 + $0x120] sm:$0xff]  ;;  %v2904_v62 = vld [vmem:[%s4757_s1 + $0x118] sm:$0xff]  ;;  %v2903_v63 = vld [vmem:[%s4757_s1 + $0x110] sm:$0xff]  ;;  %v978_v6 = vsel %vm973_vm4, %v975_v2, %v977_v5  ;;  %v980_v8 = vsel %vm973_vm4, %v977_v5, %v979_v7  ;;  %vm2622_vm15 = vcmask 982016   ;;  %s3383_s25 = scalar_lea.vmem %s2801_s29, 16  ;;  %s3387_s21 = sshll.u32 %s3448_s22, 4  ;;  %s3388_s21 = int_to_ptr.vmem [resolvable:$false] %s3387_s21 }
  0x25   : > { %892 = vmatpush1.msra.mxu1 %v2895_v28  ;;  %2870 = vmatmul.mubr.msk.f32.gmra.mxu0 %vm525_vm1, %v522_v29  ;;  %v2902_v0 = vld [vmem:[%s4757_s1 + $0x108] sm:$0xff]  ;;  %v2901_v3 = vld [vmem:[%s4757_s1 + $0x100] sm:$0xff]  ;;  %p3384_p11 = scmp.ne.s32.totalorder %s2801_s29, %s3383_s25  ;;  %s3389_s26 = scalar_lea.vmem %s3388_s21, 32 }
  0x26   : > { %2874 = vmatmul.mubr.msk.f32.gmra.mxu1 %vm525_vm1, %v3632_v17  ;;  %610 = vmatprep.mubr.f32.mxu0 %v3445_v22  ;;  %v1086_v1 = vld [vmem:[%s4758_s2] sm:$0x3]  ;;  %p3390_p0 = scmp.lt.s32.totalorder %s2801_s29, %s3388_s21  ;;  %p3391_p1 = scmp.lt.s32.totalorder %s3389_s26, %s3383_s25 }
  0x27   : > { %707 = vmatprep.mubr.f32.mxu1 %v3445_v22  ;;  %771 = vmatprep.subr.mxu0 %v2882_v31  ;;  %p3385_p12 = pnand %p3384_p11, %p3567_p5 }
  0x28   : > { %893 = vmatprep.subr.mxu1 %v2894_v32  ;;  %772 = vmatpush1.msra.mxu0 %v2881_v33  ;;  %p3392_p2 = por %p3391_p1, %p3390_p0 }
  0x29   : > { %894 = vmatpush1.msra.mxu1 %v2893_v34  ;;  %2871 = vmatmul.mubr.msk.f32.gmra.mxu0 %vm525_vm1, %v524_v35  ;;  %p3386_p13 = pneg %p3385_p12 }
  0x2a   : > { %2875 = vmatmul.mubr.msk.f32.gmra.mxu1 %vm525_vm1, %v3634_v18  ;;  %616 = vmatprep.mubr.f32.mxu0 %v3445_v22 }
  0x2b   : > { %713 = vmatprep.mubr.f32.mxu1 %v3445_v22  ;;  %773 = vmatprep.subr.mxu0 %v2880_v36  ;;  %p3393_p3 = pnand %p3392_p2, %p3386_p13 }
  0x2c   : > { %895 = vmatprep.subr.mxu1 %v2892_v37  ;;  %774 = vmatpush1.msra.mxu0 %v2879_v38 }
  0x2d   : > { %896 = vmatpush1.msra.mxu1 %v2891_v39  ;;  %2872 = vmatmul.mubr.msk.f32.gmra.mxu0 %vm525_vm1, %v523_v30  ;;  %v1088_v39 = vlaneseq }
  0x2e   : > { %2876 = vmatmul.mubr.msk.f32.gmra.mxu1 %vm525_vm1, %v3640_v23  ;;  %775 = vmatprep.subr.mxu0 %v2878_v44 }
  0x2f   : > { %809 = vmatprep.mubr.f32.mxu0 %v3445_v22  ;;  %776 = vmatpush1.msra.mxu0 %v2877_v45  ;;  %v3784_v44 = vshrl.u32 %v1088_v39, 7 }
  0x30   : > { %897 = vmatprep.subr.mxu1 %v2890_v46  ;;  %931 = vmatprep.mubr.f32.mxu1 %v3445_v22 }
  0x31   : > { %898 = vmatpush1.msra.mxu1 %v2889_v47  ;;  %2885 = vmatmul.mubr.msk.f32.vlgmr.msra.gmra.mxu0 %vm525_vm1, %v732_v48 }
  0x32   : > { %2897 = vmatmul.mubr.msk.f32.vlgmr.msra.gmra.mxu1 %vm525_vm1, %v854_v49  ;;  %815 = vmatprep.mubr.f32.mxu0 %v3445_v22 }
  0x33   : > { %937 = vmatprep.mubr.f32.mxu1 %v3445_v22  ;;  %1013 = vmatprep.subr.mxu0 %v2908_v52 }
  0x34   : > { %1014 = vmatpush1.msra.mxu0 %v2907_v53 }
  0x35   : > { %2886 = vmatmul.mubr.msk.f32.gmra.mxu0 %vm525_vm1, %v734_v54  ;;  %1015 = vmatprep.subr.mxu0 %v2906_v58 }
  0x36   : > { %2898 = vmatmul.mubr.msk.f32.gmra.mxu1 %vm525_vm1, %v856_v55  ;;  %821 = vmatprep.mubr.f32.mxu0 %v3445_v22 }
  0x37   : > { %943 = vmatprep.mubr.f32.mxu1 %v3445_v22  ;;  %1016 = vmatpush1.msra.mxu0 %v2905_v59  ;;  %v1090_v59 = vsub.s32 0, %v3784_v44 }
  0x38   : > { %1017 = vmatprep.subr.mxu0 %v2904_v62 }
  0x39   : > { %2887 = vmatmul.mubr.msk.f32.gmra.mxu0 %vm525_vm1, %v736_v60  ;;  %v1094_v60 = vsub.s32 1, %v3784_v44 }
  0x3a   : > { %2899 = vmatmul.mubr.msk.f32.gmra.mxu1 %vm525_vm1, %v858_v61  ;;  %827 = vmatprep.mubr.f32.mxu0 %v3445_v22 }
  0x3b   : > { %949 = vmatprep.mubr.f32.mxu1 %v3445_v22  ;;  %1018 = vmatpush1.msra.mxu0 %v2903_v63 }
  0x3c   : > { %1019 = vmatprep.subr.mxu0 %v2902_v0 }
  0x3d   : > { %2888 = vmatmul.mubr.msk.f32.gmra.mxu0 %vm525_vm1, %v735_v56 }
  0x3e   : > { %2900 = vmatmul.mubr.msk.f32.gmra.mxu1 %vm525_vm1, %v857_v57  ;;  %1020 = vmatpush1.msra.mxu0 %v2901_v3 }
  0x3f   : > { %1053 = vmatprep.mubr.f32.mxu0 %v3445_v22  ;;  %1232 = vmatprep.mubr.f32.mxu1 %v3445_v22 }
  0x40   : > { %1299 = vmatprep.subr.mxu0 %v3445_v22 }
  0x41   : > { %2909 = vmatmul.mubr.msk.f32.vlgmr.msra.gmra.mxu0 %vm525_vm1, %v976_v4 }
  0x42   : > { %1059 = vmatprep.mubr.f32.mxu0 %v3445_v22 }
  0x45   : > { %2910 = vmatmul.mubr.msk.f32.gmra.mxu0 %vm525_vm1, %v978_v6 }
  0x46   : > { %1065 = vmatprep.mubr.f32.mxu0 %v3445_v22 }
  0x49   : > { %2911 = vmatmul.mubr.msk.f32.gmra.mxu0 %vm525_vm1, %v980_v8 }
  0x4a   : > { %1071 = vmatprep.mubr.f32.mxu0 %v3445_v22 }
  0x4d   : > { %2912 = vmatmul.mubr.msk.f32.gmra.mxu0 %vm525_vm1, %v979_v7 }
  0xe1   : > { %v600_v9 = vpop.f32.mrf.mxu0 }
  0xe2   : > { %v697_v10 = vpop.f32.mrf.mxu1 }
  0xe3   : > { %v602_v11 = vpop.f32.mrf.mxu0  ;;  %v698_v52 = vadd.f32 %v697_v10, %v600_v9  ;;  %v1091_v10 = vrot.slane %v1086_v1, %v1090_v59 }
  0xe4   : > { %v699_v12 = vpop.f32.mrf.mxu1 }
  0xe5   : > { %v606_v13 = vpop.f32.mrf.mxu0  ;;  %v700_v49 = vadd.f32 %v699_v12, %v602_v11  ;;  %v1095_v11 = vrot.slane %v1086_v1, %v1094_v60 }
  0xe6   : > { %v703_v14 = vpop.f32.mrf.mxu1 }
  0xe7   : > { %v608_v15 = vpop.f32.mrf.mxu0  ;;  %v704_v46 = vadd.f32 %v703_v14, %v606_v13 }
  0xe8   : > { %v705_v16 = vpop.f32.mrf.mxu1 }
  0xe9   : > { %v612_v17 = vpop.f32.mrf.mxu0  ;;  %v706_v43 = vadd.f32 %v705_v16, %v608_v15 }
  0xea   : > { %v709_v18 = vpop.f32.mrf.mxu1 }
  0xeb   : > { %v614_v19 = vpop.f32.mrf.mxu0  ;;  %v710_v41 = vadd.f32 %v709_v18, %v612_v17 }
  0xec   : > { %v711_v20 = vpop.f32.mrf.mxu1 }
  0xed   : > { %v618_v21 = vpop.f32.mrf.mxu0  ;;  %v712_v47 = vadd.f32 %v711_v20, %v614_v19 }
  0xee   : > { %v715_v23 = vpop.f32.mrf.mxu1 }
  0xef   : > { %v620_v24 = vpop.f32.mrf.mxu0  ;;  %v716_v53 = vadd.f32 %v715_v23, %v618_v21 }
  0xf0   : > { %v717_v25 = vpop.f32.mrf.mxu1 }
  0xf1   : > { %v811_v26 = vpop.f32.mrf.mxu0  ;;  %v718_v57 = vadd.f32 %v717_v25, %v620_v24 }
  0xf2   : > { %v933_v27 = vpop.f32.mrf.mxu1  ;;  %v834_v62 = vadd.f32 %v811_v26, %v698_v52 }
  0xf3   : > { %v813_v28 = vpop.f32.mrf.mxu0 }
  0xf4   : > { %v935_v29 = vpop.f32.mrf.mxu1  ;;  %v835_v58 = vadd.f32 %v813_v28, %v700_v49  ;;  %v956_v14 = vadd.f32 %v933_v27, %v834_v62 }
  0xf5   : > { %v817_v30 = vpop.f32.mrf.mxu0 }
  0xf6   : > { %v939_v31 = vpop.f32.mrf.mxu1  ;;  %v836_v54 = vadd.f32 %v817_v30, %v704_v46  ;;  %v957_v9 = vadd.f32 %v935_v29, %v835_v58 }
  0xf7   : > { %v819_v32 = vpop.f32.mrf.mxu0 }
  0xf8   : > { %v941_v34 = vpop.f32.mrf.mxu1  ;;  %v837_v50 = vadd.f32 %v819_v32, %v706_v43  ;;  %v958_v5 = vadd.f32 %v939_v31, %v836_v54 }
  0xf9   : > { %v823_v33 = vpop.f32.mrf.mxu0 }
  0xfa   : > { %v945_v37 = vpop.f32.mrf.mxu1  ;;  %v838_v48 = vadd.f32 %v823_v33, %v710_v41  ;;  %v959_v2 = vadd.f32 %v941_v34, %v837_v50 }
  0xfb   : > { %v825_v35 = vpop.f32.mrf.mxu0 }
  0xfc   : > { %v947_v42 = vpop.f32.mrf.mxu1  ;;  %v839_v55 = vadd.f32 %v825_v35, %v712_v47  ;;  %v960_v63 = vadd.f32 %v945_v37, %v838_v48 }
  0xfd   : > { %v829_v36 = vpop.f32.mrf.mxu0 }
  0xfe   : > { %v951_v56 = vpop.f32.mrf.mxu1  ;;  %v840_v0 = vadd.f32 %v829_v36, %v716_v53  ;;  %v961_v6 = vadd.f32 %v947_v42, %v839_v55 }
  0xff   : > { %v831_v38 = vpop.f32.mrf.mxu0 }
 0x100   : > { %v841_v3 = vadd.f32 %v831_v38, %v718_v57  ;;  %v953_v7 = vpop.f32.mrf.mxu1  ;;  %v962_v15 = vadd.f32 %v951_v56, %v840_v0 }
 0x101   : > { %v1055_v40 = vpop.f32.mrf.mxu0 }
 0x102   : > { %v963_v18 = vadd.f32 %v953_v7, %v841_v3  ;;  %v1078_v21 = vadd.f32 %v1055_v40, %v956_v14  ;;  %v1152_v3 = vld [vmem:[%s4761_s5] sm:$0xff]  ;;  %v1281_v7 = vld [vmem:[%s4762_s6 + $0x68] sm:$0xff]  ;;  %v1274_v14 = vld [vmem:[%s4762_s6 + $0x30] sm:$0xff] }
 0x103   : > { %v1057_v45 = vpop.f32.mrf.mxu0 }
 0x104   : > { %v1079_v19 = vadd.f32 %v1057_v45, %v957_v9  ;;  %v1098_v34 = vadd.f32 %v1091_v10, %v1078_v21  ;;  %v1279_v9 = vld [vmem:[%s4762_s6 + $0x58] sm:$0xff]  ;;  %v1288_v21 = vld [vmem:[%s4762_s6 + $0xa0] sm:$0x7f] }
 0x105   : > { %v1061_v51 = vpop.f32.mrf.mxu0 }
 0x106   : > { %v1080_v16 = vadd.f32 %v1061_v51, %v958_v5  ;;  %v1099_v32 = vadd.f32 %v1095_v11, %v1079_v19  ;;  %v1106_v43 = vmax.f32 %v1098_v34, 0.0  ;;  %v1283_v5 = vld [vmem:[%s4762_s6 + $0x78] sm:$0xff]  ;;  %v1269_v19 = vld [vmem:[%s4762_s6 + $0x8] sm:$0xff] }
 0x107   : > { %v1063_v61 = vpop.f32.mrf.mxu0  ;;  %1300 = vmatpush1.msra.mxu0 %v1283_v5  ;;  %v2937_v34 = vld [vmem:[%s4759_s3 + $0x138] sm:$0xff] }
 0x108   : > { %v1081_v12 = vadd.f32 %v1063_v61, %v959_v2  ;;  %v1100_v29 = vadd.f32 %v1091_v10, %v1080_v16  ;;  %v1107_v42 = vmax.f32 %v1099_v32, 0.0  ;;  %v1122_v56 = vrot.slane %v1106_v43, 1  ;;  %1301 = vmatprep.subr.mxu0 %v3445_v22  ;;  %v1272_v16 = vld [vmem:[%s4762_s6 + $0x20] sm:$0xff]  ;;  %v2939_v32 = vld [vmem:[%s4759_s3 + $0x148] sm:$0xff]  ;;  %v2961_v5 = vld [vmem:[%s4759_s3 + $0x1b8] sm:$0xff] }
 0x109   : > { %v1067_v4 = vpop.f32.mrf.mxu0 }
 0x10a   : > { %v1082_v8 = vadd.f32 %v1067_v4, %v960_v63  ;;  %v1101_v26 = vadd.f32 %v1095_v11, %v1081_v12  ;;  %v1108_v38 = vmax.f32 %v1100_v29, 0.0  ;;  %v1125_v52 = vrot.slane %v1107_v42, 1  ;;  %v1153_v4 = vld [vmem:[%s4761_s5 + $0x8] sm:$0x3f]  ;;  %v1276_v12 = vld [vmem:[%s4762_s6 + $0x40] sm:$0xff] }
 0x10b   : > { %v1069_v13 = vpop.f32.mrf.mxu0  ;;  %v2971_v29 = vld [vmem:[%s4759_s3 + $0x208] sm:$0xf] }
 0x10c   : > { %v1083_v17 = vadd.f32 %v1069_v13, %v961_v6  ;;  %v1102_v23 = vadd.f32 %v1091_v10, %v1082_v8  ;;  %v1109_v37 = vmax.f32 %v1101_v26, 0.0  ;;  %v1123_v48 = vrot.slane %v1108_v38, 1  ;;  %v1282_v6 = vld [vmem:[%s4762_s6 + $0x70] sm:$0xff]  ;;  %v1280_v8 = vld [vmem:[%s4762_s6 + $0x60] sm:$0xff]  ;;  %v1275_v13 = vld [vmem:[%s4762_s6 + $0x38] sm:$0xff] }
 0x10d   : > { %v1073_v20 = vpop.f32.mrf.mxu0  ;;  %1302 = vmatpush1.msra.mxu0 %v1282_v6  ;;  %v1284_v26 = vld [vmem:[%s4762_s6 + $0x80] sm:$0xff]  ;;  %v2960_v6 = vld [vmem:[%s4759_s3 + $0x1b0] sm:$0xff] }
 0x10e   : > { %v1103_v24 = vadd.f32 %v1095_v11, %v1083_v17  ;;  %v1084_v25 = vadd.f32 %v1073_v20, %v962_v15  ;;  %v1110_v35 = vmax.f32 %v1102_v23, 0.0  ;;  %v1126_v47 = vrot.slane %v1109_v37, 1  ;;  %1303 = vmatprep.subr.mxu0 %v3445_v22  ;;  %v1273_v15 = vld [vmem:[%s4762_s6 + $0x28] sm:$0xff]  ;;  %v1271_v17 = vld [vmem:[%s4762_s6 + $0x18] sm:$0xff]  ;;  %v1268_v20 = vld [vmem:[%s4762_s6] sm:$0xff] }
 0x10f   : > { %v1075_v28 = vpop.f32.mrf.mxu0  ;;  %v1124_v63 = vsel %vm517_vm0, %v1122_v56, %v1123_v48  ;;  %1304 = vmatpush1.msra.mxu0 %v1281_v7  ;;  %v1287_v23 = vld [vmem:[%s4762_s6 + $0x98] sm:$0xff]  ;;  %v2959_v7 = vld [vmem:[%s4759_s3 + $0x1a8] sm:$0xff] }
 0x110   : > { %v1104_v30 = vadd.f32 %v1091_v10, %v1084_v25  ;;  %v1085_v31 = vadd.f32 %v1075_v28, %v963_v18  ;;  %v1111_v33 = vmax.f32 %v1103_v24, 0.0  ;;  %v1128_v45 = vrot.slane %v1110_v35, 1  ;;  %1305 = vmatprep.subr.mxu0 %v3445_v22  ;;  %v1278_v10 = vld [vmem:[%s4762_s6 + $0x50] sm:$0xff]  ;;  %v1285_v25 = vld [vmem:[%s4762_s6 + $0x88] sm:$0xff]  ;;  %v2941_v28 = vld [vmem:[%s4759_s3 + $0x158] sm:$0xf] }
 0x111   : > { %v1127_v61 = vsel %vm517_vm0, %v1125_v52, %v1126_v47  ;;  %v1144_v2 = vmax.f32 %v1106_v43, %v1124_v63  ;;  %1306 = vmatpush1.msra.mxu0 %v1280_v8  ;;  %v1270_v18 = vld [vmem:[%s4762_s6 + $0x10] sm:$0xff]  ;;  %v2930_v43 = vld [vmem:[%s4759_s3 + $0x100] sm:$0xff] }
 0x112   : > { %v1112_v27 = vmax.f32 %v1104_v30, 0.0  ;;  %v1105_v36 = vadd.f32 %v1095_v11, %v1085_v31  ;;  %v1130_v40 = vrot.slane %v1111_v33, 1  ;;  %v1129_v57 = vsel %vm517_vm0, %v1123_v48, %v1128_v45  ;;  %1307 = vmatprep.subr.mxu0 %v3445_v22  ;;  %v1277_v11 = vld [vmem:[%s4762_s6 + $0x48] sm:$0xff]  ;;  %v1286_v24 = vld [vmem:[%s4762_s6 + $0x90] sm:$0xff]  ;;  %v2958_v8 = vld [vmem:[%s4759_s3 + $0x1a0] sm:$0xff] }
 0x113   : > { %v1146_v0 = vmax.f32 %v1108_v38, %v1129_v57  ;;  %v1145_v1 = vmax.f32 %v1107_v42, %v1127_v61  ;;  %1308 = vmatpush1.msra.mxu0 %v1279_v9  ;;  %v2940_v30 = vld [vmem:[%s4759_s3 + $0x150] sm:$0xf]  ;;  %v2934_v38 = vld [vmem:[%s4759_s3 + $0x120] sm:$0xff]  ;;  %v2957_v9 = vld [vmem:[%s4759_s3 + $0x198] sm:$0xff] }
 0x114   : > { %v1132_v39 = vrot.slane %v1112_v27, 1  ;;  %v1113_v41 = vmax.f32 %v1105_v36, 0.0  ;;  %v1131_v55 = vsel %vm517_vm0, %v1126_v47, %v1130_v40  ;;  %1309 = vmatprep.subr.mxu0 %v3445_v22  ;;  %v2927_v47 = vld [vmem:[%s4759_s3 + $0xe8] sm:$0xff]  ;;  %v2968_v57 = vld [vmem:[%s4759_s3 + $0x1f0] sm:$0xff] }
 0x115   : > { %v1147_v62 = vmax.f32 %v1109_v37, %v1131_v55  ;;  %1310 = vmatpush1.msra.mxu0 %v1278_v10  ;;  %v2935_v37 = vld [vmem:[%s4759_s3 + $0x128] sm:$0xff]  ;;  %v2969_v55 = vld [vmem:[%s4759_s3 + $0x1f8] sm:$0xff]  ;;  %v2926_v10 = vld [vmem:[%s4759_s3 + $0xe0] sm:$0xff] }
 0x116   : > { %v1134_v46 = vrot.slane %v1113_v41, 1  ;;  %v1133_v51 = vsel %vm517_vm0, %v1128_v45, %v1132_v39  ;;  %v1150_v53 = vmax.f32 %v1112_v27, %v1132_v39  ;;  %1311 = vmatprep.subr.mxu0 %v3445_v22  ;;  %v2936_v27 = vld [vmem:[%s4759_s3 + $0x130] sm:$0xff]  ;;  %v2933_v39 = vld [vmem:[%s4759_s3 + $0x118] sm:$0xff] }
 0x117   : > { %v1148_v58 = vmax.f32 %v1110_v35, %v1133_v51  ;;  %1312 = vmatpush1.msra.mxu0 %v1277_v11  ;;  %v2929_v45 = vld [vmem:[%s4759_s3 + $0xf8] sm:$0xff]  ;;  %v2956_v11 = vld [vmem:[%s4759_s3 + $0x190] sm:$0xff] }
 0x118   : > { %v1151_v49 = vmax.f32 %v1113_v41, %v1134_v46  ;;  %v1135_v50 = vsel %vm517_vm0, %v1130_v40, %v1134_v46  ;;  %1313 = vmatprep.subr.mxu0 %v3445_v22  ;;  %v2932_v41 = vld [vmem:[%s4759_s3 + $0x110] sm:$0xff]  ;;  %v2931_v40 = vld [vmem:[%s4759_s3 + $0x108] sm:$0xff] }
 0x119   : > { %v1149_v54 = vmax.f32 %v1111_v33, %v1135_v50  ;;  %1314 = vmatpush1.msra.mxu0 %v1276_v12  ;;  %v2938_v33 = vld [vmem:[%s4759_s3 + $0x140] sm:$0xff]  ;;  %v2928_v46 = vld [vmem:[%s4759_s3 + $0xf0] sm:$0xff]  ;;  %v2925_v12 = vld [vmem:[%s4759_s3 + $0xd8] sm:$0xff] }
 0x11a   : > { %2913 = vmatprep.subr.msk.mxu1 %vm1161_vm5, %v1151_v49  ;;  %1315 = vmatprep.subr.mxu0 %v3445_v22 }
 0x11b   : > { %2914 = vmatpush1.msk.msra.mxu1 %vm1161_vm5, %v1150_v53  ;;  %1316 = vmatpush1.msra.mxu0 %v1275_v13  ;;  %v2955_v13 = vld [vmem:[%s4759_s3 + $0x188] sm:$0xff] }
 0x11c   : > { %1194 = vmatprep.subr.mxu1 %v1149_v54  ;;  %1317 = vmatprep.subr.mxu0 %v3445_v22  ;;  %v2970_v54 = vld [vmem:[%s4759_s3 + $0x200] sm:$0xf] }
 0x11d   : > { %1195 = vmatpush1.msra.mxu1 %v1148_v58  ;;  %1318 = vmatpush1.msra.mxu0 %v1274_v14  ;;  %v2924_v14 = vld [vmem:[%s4759_s3 + $0xd0] sm:$0xff] }
 0x11e   : > { %1196 = vmatprep.subr.mxu1 %v1147_v62  ;;  %1319 = vmatprep.subr.mxu0 %v3445_v22  ;;  %v2967_v62 = vld [vmem:[%s4759_s3 + $0x1e8] sm:$0xff] }
 0x11f   : > { %1197 = vmatpush1.msra.mxu1 %v1146_v0  ;;  %1320 = vmatpush1.msra.mxu0 %v1273_v15  ;;  %v2966_v0 = vld [vmem:[%s4759_s3 + $0x1e0] sm:$0xff] }
 0x120   : > { %1198 = vmatprep.subr.mxu1 %v1145_v1  ;;  %1321 = vmatprep.subr.mxu0 %v3445_v22  ;;  %v2965_v1 = vld [vmem:[%s4759_s3 + $0x1d8] sm:$0xff]  ;;  %v2954_v15 = vld [vmem:[%s4759_s3 + $0x180] sm:$0xff] }
 0x121   : > { %1199 = vmatpush1.msra.mxu1 %v1144_v2  ;;  %1322 = vmatpush1.msra.mxu0 %v1272_v16  ;;  %v2964_v2 = vld [vmem:[%s4759_s3 + $0x1d0] sm:$0xff]  ;;  %v2923_v16 = vld [vmem:[%s4759_s3 + $0xc8] sm:$0xff] }
 0x122   : > { %2915 = vmatmul.mubr.msk.f32.vlgmr.msra.gmra.mxu1 %vm1154_vm6, %v1152_v3  ;;  %1323 = vmatprep.subr.mxu0 %v3445_v22  ;;  %v2963_v3 = vld [vmem:[%s4759_s3 + $0x1c8] sm:$0xff] }
 0x123   : > { %1238 = vmatprep.mubr.f32.mxu1 %v3445_v22  ;;  %1324 = vmatpush1.msra.mxu0 %v1271_v17  ;;  %v2953_v17 = vld [vmem:[%s4759_s3 + $0x178] sm:$0xff] }
 0x124   : > { %1325 = vmatprep.subr.mxu0 %v3445_v22  ;;  %2942 = vmatprep.subr.msk.mxu1 %vm973_vm4, %v2941_v28 }
 0x125   : > { %1326 = vmatpush1.msra.mxu0 %v1270_v18  ;;  %2943 = vmatpush1.msk.msra.mxu1 %vm973_vm4, %v2940_v30  ;;  %v2922_v18 = vld [vmem:[%s4759_s3 + $0xc0] sm:$0xff] }
 0x126   : > { %2916 = vmatmul.mubr.msk.f32.gmra.mxu1 %vm1154_vm6, %v1153_v4  ;;  %1327 = vmatprep.subr.mxu0 %v3445_v22  ;;  %v2962_v4 = vld [vmem:[%s4759_s3 + $0x1c0] sm:$0xff] }
 0x127   : > { %1499 = vmatprep.mubr.f32.mxu1 %v3445_v22  ;;  %1328 = vmatpush1.msra.mxu0 %v1269_v19  ;;  %v2952_v19 = vld [vmem:[%s4759_s3 + $0x170] sm:$0xff] }
 0x128   : > { %1329 = vmatprep.subr.mxu0 %v3445_v22  ;;  %1447 = vmatprep.subr.mxu1 %v2939_v32 }
 0x129   : > { %1330 = vmatpush1.msra.mxu0 %v1268_v20  ;;  %1448 = vmatpush1.msra.mxu1 %v2938_v33  ;;  %v2921_v20 = vld [vmem:[%s4759_s3 + $0xb8] sm:$0xff] }
 0x12a   : > { %1353 = vmatprep.subr.mxu0 %v3445_v22  ;;  %1449 = vmatprep.subr.mxu1 %v2937_v34 }
 0x12b   : > { %2917 = vmatpush2.msk.msra.mxu0 %vm517_vm0, %v1288_v21  ;;  %1450 = vmatpush1.msra.mxu1 %v2936_v27  ;;  %v2951_v21 = vld [vmem:[%s4759_s3 + $0x168] sm:$0xff]  ;;  %v1394_v27 = vld [vmem:[%s4759_s3 + $0xa0] sm:$0xf] }
 0x12c   : > { %1355 = vmatprep.subr.mxu0 %v3445_v22  ;;  %1451 = vmatprep.subr.mxu1 %v2935_v37 }
 0x12d   : > { %1356 = vmatpush2.msra.mxu0 %v1287_v23  ;;  %1452 = vmatpush1.msra.mxu1 %v2934_v38  ;;  %v2920_v23 = vld [vmem:[%s4759_s3 + $0xb0] sm:$0xff] }
 0x12e   : > { %1357 = vmatprep.subr.mxu0 %v3445_v22  ;;  %1453 = vmatprep.subr.mxu1 %v2933_v39  ;;  %v1393_v39 = vld [vmem:[%s4759_s3 + $0x98] sm:$0xff] }
 0x12f   : > { %1358 = vmatpush2.msra.mxu0 %v1286_v24  ;;  %1454 = vmatpush1.msra.mxu1 %v2932_v41  ;;  %v2950_v24 = vld [vmem:[%s4759_s3 + $0x160] sm:$0xff]  ;;  %v3021_v41 = vld [vmem:[%s4759_s3 + $0x358] sm:$0xff] }
 0x130   : > { %1359 = vmatprep.subr.mxu0 %v3445_v22  ;;  %1455 = vmatprep.subr.mxu1 %v2931_v40  ;;  %v3020_v40 = vld [vmem:[%s4759_s3 + $0x350] sm:$0xff] }
 0x131   : > { %1360 = vmatpush2.msra.mxu0 %v1285_v25  ;;  %1456 = vmatpush1.msra.mxu1 %v2930_v43  ;;  %v1395_v25 = vld [vmem:[%s4759_s3 + $0xa8] sm:$0xf] }
 0x132   : > { %1361 = vmatprep.subr.mxu0 %v3445_v22  ;;  %1457 = vmatprep.subr.mxu1 %v2929_v45  ;;  %v1391_v43 = vld [vmem:[%s4759_s3 + $0x88] sm:$0xff] }
 0x133   : > { %1362 = vmatpush2.msra.mxu0 %v1284_v26  ;;  %1458 = vmatpush1.msra.mxu1 %v2928_v46  ;;  %v3023_v26 = vld [vmem:[%s4759_s3 + $0x368] sm:$0xf]  ;;  %v1390_v46 = vld [vmem:[%s4759_s3 + $0x80] sm:$0xff] }
 0x134   : > { %2972 = vmatprep.subr.msk.mxu0 %vm973_vm4, %v2971_v29  ;;  %1459 = vmatprep.subr.mxu1 %v2927_v47  ;;  %v3019_v45 = vld [vmem:[%s4759_s3 + $0x348] sm:$0xff]  ;;  %v3018_v47 = vld [vmem:[%s4759_s3 + $0x340] sm:$0xff] }
 0x135   : > { %1460 = vmatpush1.msra.mxu1 %v2926_v10  ;;  %v1377_v10 = vld [vmem:[%s4759_s3 + $0x18] sm:$0xff] }
 0x136   : > { %1461 = vmatprep.subr.mxu1 %v2925_v12  ;;  %v1376_v12 = vld [vmem:[%s4759_s3 + $0x10] sm:$0xff] }
 0x137   : > { %1462 = vmatpush1.msra.mxu1 %v2924_v14  ;;  %v1375_v14 = vld [vmem:[%s4759_s3 + $0x8] sm:$0xff] }
 0x138   : > { %1463 = vmatprep.subr.mxu1 %v2923_v16  ;;  %v1374_v16 = vld [vmem:[%s4759_s3] sm:$0xff] }
 0x139   : > { %1464 = vmatpush1.msra.mxu1 %v2922_v18  ;;  %v3002_v18 = vld [vmem:[%s4759_s3 + $0x2c0] sm:$0xff] }
 0x13a   : > { %1465 = vmatprep.subr.mxu1 %v2921_v20 }
 0x13b   : > { %1466 = vmatpush1.msra.mxu1 %v2920_v23  ;;  %v2995_v23 = vld [vmem:[%s4759_s3 + $0x2a8] sm:$0xff] }
 0x13c   : > { %2946 = vmatprep.subr.msk.mxu1 %vm973_vm4, %v1395_v25  ;;  %v2994_v25 = vld [vmem:[%s4759_s3 + $0x2a0] sm:$0xff] }
 0x1e2   : > { %v1234_v31 = vpop.f32.mrf.mxu1 }
 0x1e3   : > { %1249 = vrot.lane.b32.xlu0 %v1234_v31, %s3446_s16 }
 0x1e4   : > { %v1236_v35 = vpop.f32.mrf.mxu1 }
 0x1e6   : > { %v1240_v36 = vpop.f32.mrf.mxu1 }
 0x1e7   : > { %1251 = vrot.lane.b32.xlu0 %v1236_v35, %s3446_s16  ;;  %1253 = vrot.lane.b32.xlu1 %v1240_v36, %s3446_s16 }
 0x1e8   : > { %v1242_v42 = vpop.f32.mrf.mxu1 }
 0x1eb   : > { %1255 = vrot.lane.b32.xlu1 %v1242_v42, %s3446_s16 }
 0x255   : > { %v1250_v48 = vpop.permute.xlu0 %1249 }
 0x259   : > { %v1252_v49 = vpop.permute.xlu0 %1251  ;;  %v1254_v50 = vpop.permute.xlu1 %1253 }
 0x25a   : > { %v1258_v51 = vsel %vm1257_vm7, %v1250_v48, %v1252_v49  ;;  %v1265_v52 = vmax.f32 %v1236_v35, %v1252_v49  ;;  %v1389_v48 = vld [vmem:[%s4759_s3 + $0x78] sm:$0xff] }
 0x25b   : > { %v1264_v53 = vmax.f32 %v1234_v31, %v1258_v51  ;;  %v3017_v49 = vld [vmem:[%s4759_s3 + $0x338] sm:$0xff]  ;;  %v3016_v51 = vld [vmem:[%s4759_s3 + $0x330] sm:$0xff] }
 0x25c   : > { %2918 = vmatprep.mubr.msk.f32.mxu0 %vm1289_vm8, %v1265_v52  ;;  %v1387_v52 = vld [vmem:[%s4759_s3 + $0x68] sm:$0xff] }
 0x25d   : > { %1364 = vmatmul.mubr.f32.vlgmr.msra.gmra.mxu0 %v1264_v53  ;;  %v1256_v56 = vpop.permute.xlu1 %1255  ;;  %v3015_v53 = vld [vmem:[%s4759_s3 + $0x328] sm:$0xff] }
 0x25e   : > { %v1259_v58 = vsel %vm1257_vm7, %v1254_v50, %v1256_v56  ;;  %v1267_v61 = vmax.f32 %v1242_v42, %v1256_v56  ;;  %2973 = vmatpush1.msk.msra.mxu0 %vm973_vm4, %v2970_v54  ;;  %v1392_v42 = vld [vmem:[%s4759_s3 + $0x90] sm:$0xff]  ;;  %v1386_v54 = vld [vmem:[%s4759_s3 + $0x60] sm:$0xff]  ;;  %v1385_v56 = vld [vmem:[%s4759_s3 + $0x58] sm:$0xff] }
 0x25f   : > { %v1266_v63 = vmax.f32 %v1240_v36, %v1259_v58  ;;  %1647 = vmatprep.subr.mxu0 %v2969_v55  ;;  %v3022_v36 = vld [vmem:[%s4759_s3 + $0x360] sm:$0xf]  ;;  %v1388_v50 = vld [vmem:[%s4759_s3 + $0x70] sm:$0xff] }
 0x260   : > { %2919 = vmatprep.mubr.msk.f32.mxu0 %vm1289_vm8, %v1267_v61  ;;  %1648 = vmatpush1.msra.mxu0 %v2968_v57  ;;  %v3014_v55 = vld [vmem:[%s4759_s3 + $0x320] sm:$0xff]  ;;  %v3013_v57 = vld [vmem:[%s4759_s3 + $0x318] sm:$0xff]  ;;  %v1384_v58 = vld [vmem:[%s4759_s3 + $0x50] sm:$0xff] }
 0x261   : > { %1369 = vmatmul.mubr.f32.gmra.mxu0 %v1266_v63  ;;  %1649 = vmatprep.subr.mxu0 %v2967_v62  ;;  %v3012_v61 = vld [vmem:[%s4759_s3 + $0x310] sm:$0xff]  ;;  %v1383_v62 = vld [vmem:[%s4759_s3 + $0x48] sm:$0xff] }
 0x262   : > { %1650 = vmatpush1.msra.mxu0 %v2966_v0  ;;  %1699 = vmatprep.mubr.f32.mxu0 %v3445_v22  ;;  %v3011_v63 = vld [vmem:[%s4759_s3 + $0x308] sm:$0xff]  ;;  %v1382_v0 = vld [vmem:[%s4759_s3 + $0x40] sm:$0xff] }
 0x263   : > { %1651 = vmatprep.subr.mxu0 %v2965_v1  ;;  %v3010_v1 = vld [vmem:[%s4759_s3 + $0x300] sm:$0xff] }
 0x264   : > { %1652 = vmatpush1.msra.mxu0 %v2964_v2  ;;  %v1381_v2 = vld [vmem:[%s4759_s3 + $0x38] sm:$0xff] }
 0x265   : > { %1653 = vmatprep.subr.mxu0 %v2963_v3  ;;  %v3009_v3 = vld [vmem:[%s4759_s3 + $0x2f8] sm:$0xff] }
 0x266   : > { %1654 = vmatpush1.msra.mxu0 %v2962_v4  ;;  %v1380_v4 = vld [vmem:[%s4759_s3 + $0x30] sm:$0xff] }
 0x267   : > { %1655 = vmatprep.subr.mxu0 %v2961_v5  ;;  %v3008_v5 = vld [vmem:[%s4759_s3 + $0x2f0] sm:$0xff] }
 0x268   : > { %1656 = vmatpush1.msra.mxu0 %v2960_v6  ;;  %v1379_v6 = vld [vmem:[%s4759_s3 + $0x28] sm:$0xff] }
 0x269   : > { %1657 = vmatprep.subr.mxu0 %v2959_v7  ;;  %v3007_v7 = vld [vmem:[%s4759_s3 + $0x2e8] sm:$0xff] }
 0x26a   : > { %1658 = vmatpush1.msra.mxu0 %v2958_v8  ;;  %v1378_v8 = vld [vmem:[%s4759_s3 + $0x20] sm:$0xff] }
 0x26b   : > { %1659 = vmatprep.subr.mxu0 %v2957_v9  ;;  %v3006_v9 = vld [vmem:[%s4759_s3 + $0x2e0] sm:$0xff] }
 0x26c   : > { %1660 = vmatpush1.msra.mxu0 %v2956_v11  ;;  %v3005_v11 = vld [vmem:[%s4759_s3 + $0x2d8] sm:$0xff] }
 0x26d   : > { %1661 = vmatprep.subr.mxu0 %v2955_v13  ;;  %v3004_v13 = vld [vmem:[%s4759_s3 + $0x2d0] sm:$0xff] }
 0x26e   : > { %1662 = vmatpush1.msra.mxu0 %v2954_v15  ;;  %v3003_v15 = vld [vmem:[%s4759_s3 + $0x2c8] sm:$0xff] }
 0x26f   : > { %1663 = vmatprep.subr.mxu0 %v2953_v17 }
 0x270   : > { %1664 = vmatpush1.msra.mxu0 %v2952_v19  ;;  %v2997_v19 = vld [vmem:[%s4759_s3 + $0x2b8] sm:$0xf] }
 0x271   : > { %1665 = vmatprep.subr.mxu0 %v2951_v21  ;;  %v2996_v21 = vld [vmem:[%s4759_s3 + $0x2b0] sm:$0xf] }
 0x272   : > { %1666 = vmatpush1.msra.mxu0 %v2950_v24 }
 0x273   : > { %3024 = vmatprep.subr.msk.mxu0 %vm973_vm4, %v3023_v26  ;;  %v2993_v26 = vld [vmem:[%s4759_s3 + $0x298] sm:$0xff] }
 0x31d   : > { %v4046_v28 = vpop.f32.mrf.mxu0 }
 0x31e   : > { %v1421_v31 = vrot.slane %v4046_v28, 1  ;;  %v1622_v32 = vrot.slane %v4046_v28, 2  ;;  %v1856_v20 = vrot.slane %v4046_v28, 4 }
 0x31f   : > { %v1367_v29 = vpop.f32.mrf.mxu0 }
 0x320   : > { %v2992_v29 = vld [vmem:[%s4759_s3 + $0x290] sm:$0xff] }
 0x321   : > { %v4048_v30 = vpop.f32.mrf.mxu0 }
 0x322   : > { %v1422_v33 = vrot.slane %v4048_v30, 1  ;;  %v1623_v34 = vrot.slane %v4048_v30, 2  ;;  %v1857_v17 = vrot.slane %v4048_v30, 4 }
 0x323   : > { %v1372_v35 = vpop.f32.mrf.mxu0 }
 0x324   : > { %v1423_v37 = vsel %vm517_vm0, %v1421_v31, %v1422_v33  ;;  %v1624_v38 = vsel %vm729_vm2, %v1622_v32, %v1623_v34  ;;  %v1858_v24 = vsel %vm973_vm4, %v1856_v20, %v1857_v17  ;;  %v2991_v31 = vld [vmem:[%s4759_s3 + $0x288] sm:$0xff]  ;;  %v2990_v32 = vld [vmem:[%s4759_s3 + $0x280] sm:$0xff] }
 0x325   : > { %2944 = vmatmul.mubr.msk.f32.vlgmr.msra.gmra.mxu1 %vm1424_vm9, %v1423_v37  ;;  %2974 = vmatmul.mubr.msk.f32.vlgmr.msra.gmra.mxu0 %vm1424_vm9, %v1624_v38  ;;  %v2987_v35 = vld [vmem:[%s4759_s3 + $0x268] sm:$0xff]  ;;  %v2984_v37 = vld [vmem:[%s4759_s3 + $0x250] sm:$0xff] }
 0x326   : > { %2947 = vmatpush1.msk.msra.mxu1 %vm973_vm4, %v1394_v27  ;;  %3025 = vmatpush1.msk.msra.mxu0 %vm973_vm4, %v3022_v36  ;;  %v2986_v27 = vld [vmem:[%s4759_s3 + $0x260] sm:$0xff]  ;;  %v2985_v36 = vld [vmem:[%s4759_s3 + $0x258] sm:$0xff]  ;;  %v2983_v38 = vld [vmem:[%s4759_s3 + $0x248] sm:$0xff] }
 0x327   : > { %1534 = vmatprep.subr.mxu1 %v1393_v39  ;;  %1881 = vmatprep.subr.mxu0 %v3021_v41  ;;  %v2982_v39 = vld [vmem:[%s4759_s3 + $0x240] sm:$0xff]  ;;  %v2981_v41 = vld [vmem:[%s4759_s3 + $0x238] sm:$0xff] }
 0x328   : > { %1535 = vmatpush1.msra.mxu1 %v1392_v42  ;;  %1882 = vmatpush1.msra.mxu0 %v3020_v40  ;;  %v2980_v42 = vld [vmem:[%s4759_s3 + $0x230] sm:$0xff]  ;;  %v2979_v40 = vld [vmem:[%s4759_s3 + $0x228] sm:$0xff] }
 0x329   : > { %1505 = vmatprep.mubr.f32.mxu1 %v3445_v22  ;;  %1536 = vmatprep.subr.mxu1 %v1391_v43  ;;  %v2978_v43 = vld [vmem:[%s4759_s3 + $0x220] sm:$0xff] }
 0x32a   : > { %1705 = vmatprep.mubr.f32.mxu0 %v3445_v22  ;;  %1883 = vmatprep.subr.mxu0 %v3019_v45  ;;  %v1740_v45 = vrot.slane %v4048_v30, 3 }
 0x32b   : > { %2945 = vmatmul.mubr.msk.f32.gmra.mxu1 %vm1424_vm9, %v1422_v33  ;;  %2975 = vmatmul.mubr.msk.f32.gmra.mxu0 %vm1424_vm9, %v1623_v34  ;;  %v2989_v33 = vld [vmem:[%s4759_s3 + $0x278] sm:$0xff]  ;;  %v2988_v34 = vld [vmem:[%s4759_s3 + $0x270] sm:$0xff] }
 0x32c   : > { %1537 = vmatpush1.msra.mxu1 %v1390_v46  ;;  %1884 = vmatpush1.msra.mxu0 %v3018_v47  ;;  %v2977_v46 = vld [vmem:[%s4759_s3 + $0x218] sm:$0xff]  ;;  %v2976_v47 = vld [vmem:[%s4759_s3 + $0x210] sm:$0xff] }
 0x32d   : > { %1538 = vmatprep.subr.mxu1 %v1389_v48  ;;  %1885 = vmatprep.subr.mxu0 %v3017_v49  ;;  %v1739_v48 = vrot.slane %v4046_v28, 3 }
 0x32e   : > { %1539 = vmatpush1.msra.mxu1 %v1388_v50  ;;  %1886 = vmatpush1.msra.mxu0 %v3016_v51 }
 0x32f   : > { %1540 = vmatprep.subr.mxu1 %v1387_v52  ;;  %1887 = vmatprep.subr.mxu0 %v3015_v53  ;;  %v1741_v49 = vsel %vm851_vm3, %v1739_v48, %v1740_v45  ;;  %v2094_v48 = vld [vmem:[%s4764_s8 + $0x60] sm:$0xff] }
 0x330   : > { %1541 = vmatpush1.msra.mxu1 %v1386_v54  ;;  %1888 = vmatpush1.msra.mxu0 %v3014_v55 }
 0x331   : > { %1542 = vmatprep.subr.mxu1 %v1385_v56  ;;  %1889 = vmatprep.subr.mxu0 %v3013_v57 }
 0x332   : > { %1543 = vmatpush1.msra.mxu1 %v1384_v58  ;;  %1890 = vmatpush1.msra.mxu0 %v3012_v61 }
 0x333   : > { %1544 = vmatprep.subr.mxu1 %v1383_v62  ;;  %1891 = vmatprep.subr.mxu0 %v3011_v63 }
 0x334   : > { %1545 = vmatpush1.msra.mxu1 %v1382_v0  ;;  %1892 = vmatpush1.msra.mxu0 %v3010_v1 }
 0x335   : > { %1546 = vmatprep.subr.mxu1 %v1381_v2  ;;  %1893 = vmatprep.subr.mxu0 %v3009_v3  ;;  %v1950_v3 = vld [vmem:[%s4760_s4] sm:$0x3] }
 0x336   : > { %1547 = vmatpush1.msra.mxu1 %v1380_v4  ;;  %1894 = vmatpush1.msra.mxu0 %v3008_v5 }
 0x337   : > { %1548 = vmatprep.subr.mxu1 %v1379_v6  ;;  %1895 = vmatprep.subr.mxu0 %v3007_v7 }
 0x338   : > { %1549 = vmatpush1.msra.mxu1 %v1378_v8  ;;  %1896 = vmatpush1.msra.mxu0 %v3006_v9  ;;  %v1955_v9 = vrot.slane %v1950_v3, %v1090_v59 }
 0x339   : > { %1550 = vmatprep.subr.mxu1 %v1377_v10  ;;  %1897 = vmatprep.subr.mxu0 %v3005_v11 }
 0x33a   : > { %1551 = vmatpush1.msra.mxu1 %v1376_v12  ;;  %1898 = vmatpush1.msra.mxu0 %v3004_v13  ;;  %v1959_v13 = vrot.slane %v1950_v3, %v1094_v60  ;;  %v2187_v3 = vld [vmem:[%s4765_s9 + $0x38] sm:$0xff] }
 0x33b   : > { %1552 = vmatprep.subr.mxu1 %v1375_v14  ;;  %1899 = vmatprep.subr.mxu0 %v3003_v15 }
 0x33c   : > { %1553 = vmatpush1.msra.mxu1 %v1374_v16  ;;  %1586 = vmatprep.mubr.f32.mxu1 %v3445_v22 }
 0x33d   : > { %1900 = vmatpush1.msra.mxu0 %v3002_v18  ;;  %1933 = vmatprep.mubr.f32.mxu0 %v3445_v22 }
 0x33e   : > { %2948 = vmatmul.mubr.msk.f32.vlgmr.msra.gmra.mxu1 %vm1424_vm9, %v4046_v28  ;;  %2998 = vmatprep.subr.msk.mxu1 %vm973_vm4, %v2997_v19 }
 0x33f   : > { %3026 = vmatmul.mubr.msk.f32.vlgmr.msra.gmra.mxu0 %vm1424_vm9, %v1858_v24  ;;  %2999 = vmatpush1.msk.msra.mxu1 %vm973_vm4, %v2996_v21 }
 0x340   : > { %1764 = vmatprep.subr.mxu1 %v2995_v23  ;;  %1592 = vmatprep.mubr.f32.mxu1 %v3445_v22 }
 0x341   : > { %1765 = vmatpush1.msra.mxu1 %v2994_v25  ;;  %1939 = vmatprep.mubr.f32.mxu0 %v3445_v22 }
 0x342   : > { %2949 = vmatmul.mubr.msk.f32.gmra.mxu1 %vm1424_vm9, %v4048_v30  ;;  %1766 = vmatprep.subr.mxu1 %v2993_v26 }
 0x343   : > { %3027 = vmatmul.mubr.msk.f32.gmra.mxu0 %vm1424_vm9, %v1857_v17  ;;  %1767 = vmatpush1.msra.mxu1 %v2992_v29 }
 0x344   : > { %1768 = vmatprep.subr.mxu1 %v2991_v31  ;;  %1816 = vmatprep.mubr.f32.mxu1 %v3445_v22 }
 0x345   : > { %1769 = vmatpush1.msra.mxu1 %v2990_v32  ;;  %3168 = vmatprep.subr.mxu0 %v3445_v22 }
 0x346   : > { %1770 = vmatprep.subr.mxu1 %v2989_v33  ;;  %3188 = vmatprep.mubr.msk.f32.mxu0 %vm3447_vm13, %v3445_v22 }
 0x347   : > { %1771 = vmatpush1.msra.mxu1 %v2988_v34 }
 0x348   : > { %1772 = vmatprep.subr.mxu1 %v2987_v35 }
 0x349   : > { %1773 = vmatpush1.msra.mxu1 %v2986_v27 }
 0x34a   : > { %1774 = vmatprep.subr.mxu1 %v2985_v36 }
 0x34b   : > { %1775 = vmatpush1.msra.mxu1 %v2984_v37 }
 0x34c   : > { %1776 = vmatprep.subr.mxu1 %v2983_v38 }
 0x34d   : > { %1777 = vmatpush1.msra.mxu1 %v2982_v39 }
 0x34e   : > { %1778 = vmatprep.subr.mxu1 %v2981_v41 }
 0x34f   : > { %1779 = vmatpush1.msra.mxu1 %v2980_v42 }
 0x350   : > { %1780 = vmatprep.subr.mxu1 %v2979_v40 }
 0x351   : > { %1781 = vmatpush1.msra.mxu1 %v2978_v43  ;;  %v1988_v43 = vld [vmem:[%s4763_s7] sm:$0x1f] }
 0x352   : > { %1782 = vmatprep.subr.mxu1 %v2977_v46  ;;  %v2096_v46 = vld [vmem:[%s4764_s8 + $0x70] sm:$0xff] }
 0x353   : > { %1783 = vmatpush1.msra.mxu1 %v2976_v47  ;;  %v2095_v47 = vld [vmem:[%s4764_s8 + $0x68] sm:$0xff] }
 0x354   : > { %3000 = vmatmul.mubr.msk.f32.vlgmr.msra.gmra.mxu1 %vm1424_vm9, %v1741_v49  ;;  %v2093_v49 = vld [vmem:[%s4764_s8 + $0x58] sm:$0xff] }
 0x355   : > { %1822 = vmatprep.mubr.f32.mxu1 %v3445_v22 }
 0x358   : > { %3001 = vmatmul.mubr.msk.f32.gmra.mxu1 %vm1424_vm9, %v1740_v45  ;;  %v2097_v45 = vld [vmem:[%s4764_s8 + $0x78] sm:$0xff] }
 0x359   : > { %2064 = vmatprep.mubr.f32.mxu1 %v3445_v22 }
 0x3e5   : > { %v1501_v30 = vpop.f32.mrf.mxu1  ;;  %v1701_v52 = vpop.f32.mrf.mxu0 }
 0x3e7   : > { %v1503_v50 = vpop.f32.mrf.mxu1  ;;  %v1703_v54 = vpop.f32.mrf.mxu0 }
 0x3eb   : > { %v1507_v51 = vpop.f32.mrf.mxu1  ;;  %v1707_v55 = vpop.f32.mrf.mxu0 }
 0x3ed   : > { %v1509_v53 = vpop.f32.mrf.mxu1  ;;  %v1709_v57 = vpop.f32.mrf.mxu0 }
 0x3fe   : > { %v1588_v28 = vpop.f32.mrf.mxu1 }
 0x3ff   : > { %v1589_v61 = vadd.f32 %v1588_v28, %v1501_v30  ;;  %v1935_v62 = vpop.f32.mrf.mxu0  ;;  %v2092_v30 = vld [vmem:[%s4764_s8 + $0x50] sm:$0xff]  ;;  %v2086_v28 = vld [vmem:[%s4764_s8 + $0x20] sm:$0xff] }
 0x400   : > { %v1590_v56 = vpop.f32.mrf.mxu1 }
 0x401   : > { %v1591_v63 = vadd.f32 %v1590_v56, %v1503_v50  ;;  %v1712_v2 = vadd.f32 %v1701_v52, %v1589_v61  ;;  %v1937_v4 = vpop.f32.mrf.mxu0  ;;  %v2091_v50 = vld [vmem:[%s4764_s8 + $0x48] sm:$0xff]  ;;  %v2089_v52 = vld [vmem:[%s4764_s8 + $0x38] sm:$0xff]  ;;  %v2084_v56 = vld [vmem:[%s4764_s8 + $0x10] sm:$0xff] }
 0x402   : > { %v1594_v58 = vpop.f32.mrf.mxu1  ;;  %v2101_v61 = vld [vmem:[%s4764_s8 + $0x98] sm:$0x7f] }
 0x403   : > { %v1595_v1 = vadd.f32 %v1594_v58, %v1507_v51  ;;  %v1713_v8 = vadd.f32 %v1703_v54, %v1591_v63  ;;  %v1941_v15 = vpop.f32.mrf.mxu0  ;;  %v2090_v51 = vld [vmem:[%s4764_s8 + $0x40] sm:$0xff]  ;;  %v2087_v54 = vld [vmem:[%s4764_s8 + $0x28] sm:$0xff] }
 0x404   : > { %v1596_v0 = vpop.f32.mrf.mxu1  ;;  %v2082_v58 = vld [vmem:[%s4764_s8] sm:$0xff]  ;;  %v2099_v63 = vld [vmem:[%s4764_s8 + $0x88] sm:$0xff] }
 0x405   : > { %v1597_v6 = vadd.f32 %v1596_v0, %v1509_v53  ;;  %v1714_v14 = vadd.f32 %v1707_v55, %v1595_v1  ;;  %v1943_v26 = vpop.f32.mrf.mxu0  ;;  %v2088_v53 = vld [vmem:[%s4764_s8 + $0x30] sm:$0xff]  ;;  %v2085_v55 = vld [vmem:[%s4764_s8 + $0x18] sm:$0xff]  ;;  %v2098_v0 = vld [vmem:[%s4764_s8 + $0x80] sm:$0xff] }
 0x406   : > { %v2189_v1 = vld [vmem:[%s4765_s9 + $0x48] sm:$0xff] }
 0x407   : > { %v1715_v19 = vadd.f32 %v1709_v57, %v1597_v6  ;;  %v2083_v57 = vld [vmem:[%s4764_s8 + $0x8] sm:$0xff]  ;;  %3169 = vmatpush3.msra.mxu0 %v2189_v1  ;;  %v2620_v1 = vld [vmem:[%s4767_s11 + $0x70] sm:$0xff] }
 0x408   : > { %3170 = vmatprep.subr.mxu0 %v3445_v22 }
 0x414   : > { %v1818_v5 = vpop.f32.mrf.mxu1 }
 0x415   : > { %v1829_v7 = vadd.f32 %v1818_v5, %v1712_v2  ;;  %v2188_v2 = vld [vmem:[%s4765_s9 + $0x40] sm:$0xff]  ;;  %v2185_v5 = vld [vmem:[%s4765_s9 + $0x28] sm:$0xff] }
 0x416   : > { %v1820_v10 = vpop.f32.mrf.mxu1  ;;  %3171 = vmatpush3.msra.mxu0 %v2188_v2  ;;  %v2619_v2 = vld [vmem:[%s4767_s11 + $0x68] sm:$0xff] }
 0x417   : > { %v1946_v11 = vadd.f32 %v1935_v62, %v1829_v7  ;;  %v1830_v12 = vadd.f32 %v1820_v10, %v1713_v8  ;;  %v2100_v62 = vld [vmem:[%s4764_s8 + $0x90] sm:$0xff]  ;;  %3172 = vmatprep.subr.mxu0 %v3445_v22  ;;  %v2184_v7 = vld [vmem:[%s4765_s9 + $0x20] sm:$0xff] }
 0x418   : > { %v1824_v16 = vpop.f32.mrf.mxu1  ;;  %3173 = vmatpush3.msra.mxu0 %v2187_v3  ;;  %v2182_v10 = vld [vmem:[%s4765_s9 + $0x10] sm:$0xff]  ;;  %v2618_v3 = vld [vmem:[%s4767_s11 + $0x60] sm:$0xff] }
 0x419   : > { %v1947_v17 = vadd.f32 %v1937_v4, %v1830_v12  ;;  %v1831_v18 = vadd.f32 %v1824_v16, %v1714_v14  ;;  %v1962_v21 = vadd.f32 %v1955_v9, %v1946_v11  ;;  %v2186_v4 = vld [vmem:[%s4765_s9 + $0x30] sm:$0xff]  ;;  %3174 = vmatprep.subr.mxu0 %v3445_v22  ;;  %v2181_v11 = vld [vmem:[%s4765_s9 + $0x8] sm:$0xff]  ;;  %v2180_v12 = vld [vmem:[%s4765_s9] sm:$0xff] }
 0x41a   : > { %v1826_v20 = vpop.f32.mrf.mxu1  ;;  %3175 = vmatpush3.msra.mxu0 %v2186_v4  ;;  %v2617_v4 = vld [vmem:[%s4767_s11 + $0x58] sm:$0xff] }
 0x41b   : > { %v1963_v23 = vadd.f32 %v1959_v13, %v1947_v17  ;;  %v1948_v24 = vadd.f32 %v1941_v15, %v1831_v18  ;;  %v1832_v25 = vadd.f32 %v1826_v20, %v1715_v19  ;;  %v1966_v31 = vmax.f32 %v1962_v21, 0.0  ;;  %3176 = vmatprep.subr.mxu0 %v3445_v22  ;;  %v3054_v18 = vld [vmem:[%s4765_s9 + $0xe8] sm:$0xff]  ;;  %v3053_v19 = vld [vmem:[%s4765_s9 + $0xe0] sm:$0xff]  ;;  %v3052_v20 = vld [vmem:[%s4765_s9 + $0xd8] sm:$0xff] }
 0x41c   : > { %3177 = vmatpush3.msra.mxu0 %v2185_v5  ;;  %v3051_v21 = vld [vmem:[%s4765_s9 + $0xd0] sm:$0xff] }
 0x41d   : > { %v1964_v29 = vadd.f32 %v1955_v9, %v1948_v24  ;;  %v1949_v59 = vadd.f32 %v1943_v26, %v1832_v25  ;;  %v1967_v32 = vmax.f32 %v1963_v23, 0.0  ;;  %v1974_v35 = vrot.slane %v1966_v31, 1  ;;  %3178 = vmatprep.subr.mxu0 %v3445_v22  ;;  %v2183_v9 = vld [vmem:[%s4765_s9 + $0x18] sm:$0xff]  ;;  %v3050_v23 = vld [vmem:[%s4765_s9 + $0xc8] sm:$0xff]  ;;  %v3049_v24 = vld [vmem:[%s4765_s9 + $0xc0] sm:$0xff] }
 0x41e   : > { %3179 = vmatpush3.msra.mxu0 %v2184_v7  ;;  %v3048_v25 = vld [vmem:[%s4765_s9 + $0xb8] sm:$0xff]  ;;  %v3047_v26 = vld [vmem:[%s4765_s9 + $0xb0] sm:$0xff]  ;;  %v2614_v7 = vld [vmem:[%s4767_s11 + $0x40] sm:$0xff] }
 0x41f   : > { %v1968_v33 = vmax.f32 %v1964_v29, 0.0  ;;  %v1965_v34 = vadd.f32 %v1959_v13, %v1949_v59  ;;  %v1977_v27 = vrot.slane %v1967_v32, 1  ;;  %3180 = vmatprep.subr.mxu0 %v3445_v22  ;;  %v3046_v29 = vld [vmem:[%s4765_s9 + $0xa8] sm:$0xff]  ;;  %v3045_v59 = vld [vmem:[%s4765_s9 + $0xa0] sm:$0xff]  ;;  %v2616_v5 = vld [vmem:[%s4767_s11 + $0x50] sm:$0xff] }
 0x420   : > { %3181 = vmatpush3.msra.mxu0 %v2183_v9  ;;  %v2612_v9 = vld [vmem:[%s4767_s11 + $0x30] sm:$0xff] }
 0x421   : > { %v1975_v44 = vrot.slane %v1968_v33, 1  ;;  %v1969_v60 = vmax.f32 %v1965_v34, 0.0  ;;  %3182 = vmatprep.subr.mxu0 %v3445_v22  ;;  %v3042_v34 = vld [vmem:[%s4765_s9 + $0x90] sm:$0xff] }
 0x422   : > { %3183 = vmatpush3.msra.mxu0 %v2182_v10  ;;  %v2611_v10 = vld [vmem:[%s4767_s11 + $0x28] sm:$0xff] }
 0x423   : > { %v1978_v36 = vrot.slane %v1969_v60, 1  ;;  %v1976_v39 = vsel %vm517_vm0, %v1974_v35, %v1975_v44  ;;  %v1986_v41 = vmax.f32 %v1968_v33, %v1975_v44  ;;  %3184 = vmatprep.subr.mxu0 %v3445_v22  ;;  %v3076_v44 = vld [vmem:[%s4765_s9 + $0x188] sm:$0xff] }
 0x424   : > { %v1984_v40 = vmax.f32 %v1966_v31, %v1976_v39  ;;  %3185 = vmatpush3.msra.mxu0 %v2181_v11  ;;  %v3043_v31 = vld [vmem:[%s4765_s9 + $0x98] sm:$0xff]  ;;  %v3041_v35 = vld [vmem:[%s4765_s9 + $0x88] sm:$0xff]  ;;  %v3073_v39 = vld [vmem:[%s4765_s9 + $0x170] sm:$0xff] }
 0x425   : > { %v1987_v37 = vmax.f32 %v1969_v60, %v1978_v36  ;;  %v1979_v38 = vsel %vm517_vm0, %v1977_v27, %v1978_v36  ;;  %3186 = vmatprep.subr.mxu0 %v3445_v22  ;;  %v3075_v27 = vld [vmem:[%s4765_s9 + $0x180] sm:$0xff] }
 0x426   : > { %v1985_v42 = vmax.f32 %v1967_v32, %v1979_v38  ;;  %3187 = vmatpush3.msra.mxu0 %v2180_v12  ;;  %v3040_v36 = vld [vmem:[%s4765_s9 + $0x80] sm:$0xff]  ;;  %v3039_v38 = vld [vmem:[%s4765_s9 + $0x78] sm:$0xff] }
 0x427   : > { %3028 = vmatprep.subr.msk.mxu1 %vm1993_vm10, %v1987_v37  ;;  %3191 = vmatprep.subr.mxu0 %v3445_v22  ;;  %v3074_v37 = vld [vmem:[%s4765_s9 + $0x178] sm:$0xff]  ;;  %v2610_v11 = vld [vmem:[%s4767_s11 + $0x20] sm:$0xff] }
 0x428   : > { %3029 = vmatpush1.msk.msra.mxu1 %vm1993_vm10, %v1986_v41  ;;  %v3038_v41 = vld [vmem:[%s4765_s9 + $0x70] sm:$0xff]  ;;  %v2609_v12 = vld [vmem:[%s4767_s11 + $0x18] sm:$0xff] }
 0x429   : > { %2030 = vmatprep.subr.mxu1 %v1985_v42  ;;  %v3072_v42 = vld [vmem:[%s4765_s9 + $0x168] sm:$0xff] }
 0x42a   : > { %2031 = vmatpush1.msra.mxu1 %v1984_v40  ;;  %v3037_v40 = vld [vmem:[%s4765_s9 + $0x68] sm:$0xff] }
 0x42b   : > { %3030 = vmatmul.mubr.msk.f32.vlgmr.msra.gmra.mxu1 %vm1989_vm11, %v1988_v43  ;;  %2109 = vmatprep.subr.mxu1 %v3445_v22  ;;  %v3071_v43 = vld [vmem:[%s4765_s9 + $0x160] sm:$0xff] }
 0x42c   : > { %2110 = vmatpush1.msra.mxu1 %v2097_v45  ;;  %v3036_v45 = vld [vmem:[%s4765_s9 + $0x60] sm:$0xff] }
 0x42d   : > { %2111 = vmatprep.subr.mxu1 %v3445_v22 }
 0x42e   : > { %2112 = vmatpush1.msra.mxu1 %v2096_v46  ;;  %v3070_v46 = vld [vmem:[%s4765_s9 + $0x158] sm:$0xff] }
 0x42f   : > { %2113 = vmatprep.subr.mxu1 %v3445_v22 }
 0x430   : > { %2114 = vmatpush1.msra.mxu1 %v2095_v47  ;;  %v3035_v47 = vld [vmem:[%s4765_s9 + $0x58] sm:$0xff] }
 0x431   : > { %2115 = vmatprep.subr.mxu1 %v3445_v22 }
 0x432   : > { %2116 = vmatpush1.msra.mxu1 %v2094_v48  ;;  %v3069_v48 = vld [vmem:[%s4765_s9 + $0x150] sm:$0xff] }
 0x433   : > { %2117 = vmatprep.subr.mxu1 %v3445_v22 }
 0x434   : > { %2118 = vmatpush1.msra.mxu1 %v2093_v49  ;;  %v3034_v49 = vld [vmem:[%s4765_s9 + $0x50] sm:$0xff] }
 0x435   : > { %2119 = vmatprep.subr.mxu1 %v3445_v22 }
 0x436   : > { %2120 = vmatpush1.msra.mxu1 %v2092_v30  ;;  %v3068_v30 = vld [vmem:[%s4765_s9 + $0x148] sm:$0xff] }
 0x437   : > { %2121 = vmatprep.subr.mxu1 %v3445_v22 }
 0x438   : > { %2122 = vmatpush1.msra.mxu1 %v2091_v50 }
 0x439   : > { %2123 = vmatprep.subr.mxu1 %v3445_v22 }
 0x43a   : > { %2124 = vmatpush1.msra.mxu1 %v2090_v51  ;;  %v3065_v51 = vld [vmem:[%s4765_s9 + $0x138] sm:$0xff] }
 0x43b   : > { %2125 = vmatprep.subr.mxu1 %v3445_v22 }
 0x43c   : > { %2126 = vmatpush1.msra.mxu1 %v2089_v52  ;;  %v3067_v52 = vld [vmem:[%s4765_s9 + $0x140] sm:$0xff] }
 0x43d   : > { %2127 = vmatprep.subr.mxu1 %v3445_v22 }
 0x43e   : > { %2128 = vmatpush1.msra.mxu1 %v2088_v53 }
 0x43f   : > { %2129 = vmatprep.subr.mxu1 %v3445_v22 }
 0x440   : > { %2130 = vmatpush1.msra.mxu1 %v2087_v54  ;;  %v3064_v54 = vld [vmem:[%s4765_s9 + $0x130] sm:$0xff] }
 0x441   : > { %2131 = vmatprep.subr.mxu1 %v3445_v22 }
 0x442   : > { %2132 = vmatpush1.msra.mxu1 %v2086_v28  ;;  %v3063_v28 = vld [vmem:[%s4765_s9 + $0x128] sm:$0xff] }
 0x443   : > { %2133 = vmatprep.subr.mxu1 %v3445_v22 }
 0x444   : > { %2134 = vmatpush1.msra.mxu1 %v2085_v55  ;;  %v3062_v55 = vld [vmem:[%s4765_s9 + $0x120] sm:$0xff] }
 0x445   : > { %2135 = vmatprep.subr.mxu1 %v3445_v22 }
 0x446   : > { %2136 = vmatpush1.msra.mxu1 %v2084_v56  ;;  %v3061_v56 = vld [vmem:[%s4765_s9 + $0x118] sm:$0xff] }
 0x447   : > { %2137 = vmatprep.subr.mxu1 %v3445_v22 }
 0x448   : > { %2138 = vmatpush1.msra.mxu1 %v2083_v57  ;;  %v3060_v57 = vld [vmem:[%s4765_s9 + $0x110] sm:$0xff] }
 0x449   : > { %2139 = vmatprep.subr.mxu1 %v3445_v22 }
 0x44a   : > { %2140 = vmatpush1.msra.mxu1 %v2082_v58  ;;  %v3059_v58 = vld [vmem:[%s4765_s9 + $0x108] sm:$0xff] }
 0x44b   : > { %2165 = vmatprep.subr.mxu1 %v3445_v22 }
 0x44c   : > { %3031 = vmatpush2.msk.msra.mxu1 %vm517_vm0, %v2101_v61  ;;  %v3058_v61 = vld [vmem:[%s4765_s9 + $0x100] sm:$0xff]  ;;  %vm2785_vm0 = vcmask 73728  }
 0x44d   : > { %2167 = vmatprep.subr.mxu1 %v3445_v22 }
 0x44e   : > { %2168 = vmatpush2.msra.mxu1 %v2100_v62  ;;  %v3057_v62 = vld [vmem:[%s4765_s9 + $0xf8] sm:$0xff] }
 0x44f   : > { %2169 = vmatprep.subr.mxu1 %v3445_v22 }
 0x450   : > { %2170 = vmatpush2.msra.mxu1 %v2099_v63  ;;  %v3056_v63 = vld [vmem:[%s4765_s9 + $0xf0] sm:$0xff] }
 0x451   : > { %2171 = vmatprep.subr.mxu1 %v3445_v22 }
 0x452   : > { %2172 = vmatpush2.msra.mxu1 %v2098_v0 }
 0x453   : > { %3214 = vmatprep.subr.mxu1 %v3445_v22 }
 0x4eb   : > { %v2066_v6 = vpop.f32.mrf.mxu1 }
 0x4ec   : > { %2073 = vrot.lane.b32.xlu0 %v2066_v6, %s3446_s16 }
 0x4ed   : > { %v2068_v8 = vpop.f32.mrf.mxu1 }
 0x4ee   : > { %2075 = vrot.lane.b32.xlu1 %v2068_v8, %s3446_s16 }
 0x55e   : > { %v2074_v13 = vpop.permute.xlu0 %2073 }
 0x560   : > { %v2076_v14 = vpop.permute.xlu1 %2075 }
 0x561   : > { %v2077_v15 = vsel %vm1257_vm7, %v2074_v13, %v2076_v14  ;;  %v2081_v16 = vmax.f32 %v2068_v8, %v2076_v14  ;;  %v2613_v8 = vld [vmem:[%s4767_s11 + $0x38] sm:$0xff]  ;;  %v2608_v13 = vld [vmem:[%s4767_s11 + $0x10] sm:$0xff]  ;;  %v2607_v14 = vld [vmem:[%s4767_s11 + $0x8] sm:$0xff] }
 0x562   : > { %v2080_v17 = vmax.f32 %v2066_v6, %v2077_v15  ;;  %v2615_v6 = vld [vmem:[%s4767_s11 + $0x48] sm:$0xff]  ;;  %v2606_v15 = vld [vmem:[%s4767_s11] sm:$0xff] }
 0x563   : > { %3032 = vmatprep.mubr.msk.f32.mxu1 %vm2102_vm12, %v2081_v16  ;;  %v2707_v16 = vld [vmem:[%s4769_s13 + $0x50] sm:$0xf] }
 0x564   : > { %2174 = vmatmul.mubr.f32.vlgmr.msra.gmra.mxu1 %v2080_v17  ;;  %v2706_v17 = vld [vmem:[%s4769_s13 + $0x48] sm:$0xff] }
 0x565   : > { %3215 = vmatpush3.msra.mxu1 %v3054_v18  ;;  %3234 = vmatprep.mubr.msk.f32.mxu1 %vm3447_vm13, %v3445_v22  ;;  %v2705_v18 = vld [vmem:[%s4769_s13 + $0x40] sm:$0xff] }
 0x566   : > { %3216 = vmatprep.subr.mxu1 %v3445_v22 }
 0x567   : > { %3217 = vmatpush3.msra.mxu1 %v3053_v19  ;;  %v2704_v19 = vld [vmem:[%s4769_s13 + $0x38] sm:$0xff] }
 0x568   : > { %3218 = vmatprep.subr.mxu1 %v3445_v22 }
 0x569   : > { %3219 = vmatpush3.msra.mxu1 %v3052_v20  ;;  %v2703_v20 = vld [vmem:[%s4769_s13 + $0x30] sm:$0xff] }
 0x56a   : > { %3220 = vmatprep.subr.mxu1 %v3445_v22 }
 0x56b   : > { %3221 = vmatpush3.msra.mxu1 %v3051_v21  ;;  %v2702_v21 = vld [vmem:[%s4769_s13 + $0x28] sm:$0xff] }
 0x56c   : > { %3222 = vmatprep.subr.mxu1 %v3445_v22 }
 0x56d   : > { %3223 = vmatpush3.msra.mxu1 %v3050_v23  ;;  %v2701_v23 = vld [vmem:[%s4769_s13 + $0x20] sm:$0xff] }
 0x56e   : > { %3224 = vmatprep.subr.mxu1 %v3445_v22 }
 0x56f   : > { %3225 = vmatpush3.msra.mxu1 %v3049_v24  ;;  %v2700_v24 = vld [vmem:[%s4769_s13 + $0x18] sm:$0xff] }
 0x570   : > { %3226 = vmatprep.subr.mxu1 %v3445_v22 }
 0x571   : > { %3227 = vmatpush3.msra.mxu1 %v3048_v25 }
 0x572   : > { %3228 = vmatprep.subr.mxu1 %v3445_v22 }
 0x573   : > { %3229 = vmatpush3.msra.mxu1 %v3047_v26 }
 0x574   : > { %3230 = vmatprep.subr.mxu1 %v3445_v22 }
 0x575   : > { %3231 = vmatpush3.msra.mxu1 %v3046_v29 }
 0x576   : > { %3232 = vmatprep.subr.mxu1 %v3445_v22 }
 0x577   : > { %3233 = vmatpush3.msra.mxu1 %v3045_v59 }
 0x578   : > { %3260 = vmatprep.subr.mxu1 %v3445_v22 }
 0x624   : > { %v4464_v32 = vpop.f32.mrf.mxu1 }
 0x625   : > { %v2361_v33 = vrot.slane %v4464_v32, 2  ;;  %3189 = vmatmul.mubr.msk.f32.vlgmr.msra.gmra.mxu0 %vm2190_vm14, %v4464_v32  ;;  %v2276_v50 = vrot.slane %v4464_v32, 1  ;;  %v2531_v53 = vrot.slane %v4464_v32, 4  ;;  %v2446_v0 = vrot.slane %v4464_v32, 3 }
 0x626   : > { %3192 = vmatpush3.msra.mxu0 %v3043_v31  ;;  %v2177_v60 = vpop.f32.mrf.mxu1  ;;  %3211 = vmatprep.mubr.msk.f32.mxu0 %vm3447_vm13, %v3445_v22 }
 0x627   : > { %3193 = vmatprep.subr.mxu0 %v3445_v22  ;;  %3235 = vmatmul.mubr.msk.f32.vlgmr.msra.gmra.mxu1 %vm2190_vm14, %v2361_v33 }
 0x628   : > { %3194 = vmatpush3.msra.mxu0 %v3042_v34  ;;  %3261 = vmatpush3.msra.mxu1 %v3076_v44  ;;  %v2179_v44 = vld [vmem:[%s4766_s10] sm:$0x1] }
 0x629   : > { %3195 = vmatprep.subr.mxu0 %v3445_v22  ;;  %3262 = vmatprep.subr.mxu1 %v3445_v22 }
 0x62a   : > { %3196 = vmatpush3.msra.mxu0 %v3041_v35  ;;  %3263 = vmatpush3.msra.mxu1 %v3075_v27 }
 0x62b   : > { %3197 = vmatprep.subr.mxu0 %v3445_v22  ;;  %3264 = vmatprep.subr.mxu1 %v3445_v22 }
 0x62c   : > { %3198 = vmatpush3.msra.mxu0 %v3040_v36  ;;  %3265 = vmatpush3.msra.mxu1 %v3074_v37 }
 0x62d   : > { %3199 = vmatprep.subr.mxu0 %v3445_v22  ;;  %3266 = vmatprep.subr.mxu1 %v3445_v22 }
 0x62e   : > { %3200 = vmatpush3.msra.mxu0 %v3039_v38  ;;  %3267 = vmatpush3.msra.mxu1 %v3073_v39 }
 0x62f   : > { %3201 = vmatprep.subr.mxu0 %v3445_v22  ;;  %3268 = vmatprep.subr.mxu1 %v3445_v22 }
 0x630   : > { %3202 = vmatpush3.msra.mxu0 %v3038_v41  ;;  %3269 = vmatpush3.msra.mxu1 %v3072_v42  ;;  %v2699_v42 = vld [vmem:[%s4769_s13 + $0x10] sm:$0xff] }
 0x631   : > { %3203 = vmatprep.subr.mxu0 %v3445_v22  ;;  %3270 = vmatprep.subr.mxu1 %v3445_v22 }
 0x632   : > { %3204 = vmatpush3.msra.mxu0 %v3037_v40  ;;  %3271 = vmatpush3.msra.mxu1 %v3071_v43  ;;  %v2698_v40 = vld [vmem:[%s4769_s13 + $0x8] sm:$0xff]  ;;  %v2697_v43 = vld [vmem:[%s4769_s13] sm:$0xff] }
 0x633   : > { %3205 = vmatprep.subr.mxu0 %v3445_v22  ;;  %3272 = vmatprep.subr.mxu1 %v3445_v22 }
 0x634   : > { %3206 = vmatpush3.msra.mxu0 %v3036_v45  ;;  %3273 = vmatpush3.msra.mxu1 %v3070_v46  ;;  %v2621_v45 = vld [vmem:[%s4768_s12] sm:$0x1] }
 0x635   : > { %3207 = vmatprep.subr.mxu0 %v3445_v22  ;;  %3274 = vmatprep.subr.mxu1 %v3445_v22 }
 0x636   : > { %3208 = vmatpush3.msra.mxu0 %v3035_v47  ;;  %3275 = vmatpush3.msra.mxu1 %v3069_v48 }
 0x637   : > { %3209 = vmatprep.subr.mxu0 %v3445_v22  ;;  %3276 = vmatprep.subr.mxu1 %v3445_v22 }
 0x638   : > { %3210 = vmatpush3.msra.mxu0 %v3034_v49  ;;  %3277 = vmatpush3.msra.mxu1 %v3068_v30 }
 0x639   : > { %3212 = vmatmul.mubr.msk.f32.vlgmr.msra.gmra.mxu0 %vm2190_vm14, %v2276_v50  ;;  %3237 = vmatprep.subr.mxu0 %v3445_v22 }
 0x63a   : > { %3278 = vmatprep.subr.mxu1 %v3445_v22  ;;  %3238 = vmatpush3.msra.mxu0 %v3065_v51 }
 0x63b   : > { %3279 = vmatpush3.msra.mxu1 %v3067_v52  ;;  %3280 = vmatprep.mubr.msk.f32.mxu1 %vm3447_vm13, %v3445_v22 }
 0x63c   : > { %3239 = vmatprep.subr.mxu0 %v3445_v22  ;;  %3281 = vmatmul.mubr.msk.f32.vlgmr.msra.gmra.mxu1 %vm2190_vm14, %v2531_v53 }
 0x63d   : > { %3240 = vmatpush3.msra.mxu0 %v3064_v54  ;;  %3257 = vmatprep.mubr.msk.f32.mxu0 %vm3447_vm13, %v3445_v22 }
 0x63e   : > { %3241 = vmatprep.subr.mxu0 %v3445_v22  ;;  %3316 = vmatprep.subr.mxu1 %v3445_v22 }
 0x63f   : > { %3242 = vmatpush3.msra.mxu0 %v3063_v28  ;;  %3338 = vmatprep.mubr.msk.f32.mxu1 %vm3447_vm13, %v3445_v22 }
 0x640   : > { %3243 = vmatprep.subr.mxu0 %v3445_v22  ;;  %3317 = vmatpush3.msk.msra.mxu1 %vm973_vm4, %v2707_v16 }
 0x641   : > { %3244 = vmatpush3.msra.mxu0 %v3062_v55  ;;  %3318 = vmatprep.subr.mxu1 %v3445_v22 }
 0x642   : > { %3245 = vmatprep.subr.mxu0 %v3445_v22  ;;  %3319 = vmatpush3.msra.mxu1 %v2706_v17 }
 0x643   : > { %3246 = vmatpush3.msra.mxu0 %v3061_v56  ;;  %3320 = vmatprep.subr.mxu1 %v3445_v22 }
 0x644   : > { %3247 = vmatprep.subr.mxu0 %v3445_v22  ;;  %3321 = vmatpush3.msra.mxu1 %v2705_v18 }
 0x645   : > { %3248 = vmatpush3.msra.mxu0 %v3060_v57  ;;  %3322 = vmatprep.subr.mxu1 %v3445_v22 }
 0x646   : > { %3249 = vmatprep.subr.mxu0 %v3445_v22  ;;  %3323 = vmatpush3.msra.mxu1 %v2704_v19 }
 0x647   : > { %3250 = vmatpush3.msra.mxu0 %v3059_v58  ;;  %3324 = vmatprep.subr.mxu1 %v3445_v22 }
 0x648   : > { %3251 = vmatprep.subr.mxu0 %v3445_v22  ;;  %3325 = vmatpush3.msra.mxu1 %v2703_v20 }
 0x649   : > { %3252 = vmatpush3.msra.mxu0 %v3058_v61  ;;  %3326 = vmatprep.subr.mxu1 %v3445_v22 }
 0x64a   : > { %3253 = vmatprep.subr.mxu0 %v3445_v22  ;;  %3327 = vmatpush3.msra.mxu1 %v2702_v21 }
 0x64b   : > { %3254 = vmatpush3.msra.mxu0 %v3057_v62  ;;  %3328 = vmatprep.subr.mxu1 %v3445_v22 }
 0x64c   : > { %3255 = vmatprep.subr.mxu0 %v3445_v22  ;;  %3329 = vmatpush3.msra.mxu1 %v2701_v23 }
 0x64d   : > { %3256 = vmatpush3.msra.mxu0 %v3056_v63  ;;  %3330 = vmatprep.subr.mxu1 %v3445_v22 }
 0x64e   : > { %3258 = vmatmul.mubr.msk.f32.vlgmr.msra.gmra.mxu0 %vm2190_vm14, %v2446_v0  ;;  %3283 = vmatprep.subr.mxu0 %v3445_v22 }
 0x64f   : > { %3313 = vmatprep.mubr.msk.f32.mxu0 %vm3447_vm13, %v3445_v22  ;;  %3284 = vmatpush3.msra.mxu0 %v2620_v1 }
 0x650   : > { %3285 = vmatprep.subr.mxu0 %v3445_v22  ;;  %3331 = vmatpush3.msra.mxu1 %v2700_v24 }
 0x651   : > { %3286 = vmatpush3.msra.mxu0 %v2619_v2  ;;  %3332 = vmatprep.subr.mxu1 %v3445_v22 }
 0x652   : > { %3287 = vmatprep.subr.mxu0 %v3445_v22  ;;  %3333 = vmatpush3.msra.mxu1 %v2699_v42 }
 0x653   : > { %3288 = vmatpush3.msra.mxu0 %v2618_v3  ;;  %3334 = vmatprep.subr.mxu1 %v3445_v22 }
 0x654   : > { %3289 = vmatprep.subr.mxu0 %v3445_v22  ;;  %3335 = vmatpush3.msra.mxu1 %v2698_v40 }
 0x655   : > { %3290 = vmatpush3.msra.mxu0 %v2617_v4  ;;  %3336 = vmatprep.subr.mxu1 %v3445_v22 }
 0x656   : > { %3291 = vmatprep.subr.mxu0 %v3445_v22  ;;  %3337 = vmatpush3.msra.mxu1 %v2697_v43 }
 0x657   : > { %3292 = vmatpush3.msra.mxu0 %v2616_v5 }
 0x658   : > { %3293 = vmatprep.subr.mxu0 %v3445_v22 }
 0x659   : > { %3294 = vmatpush3.msra.mxu0 %v2615_v6 }
 0x65a   : > { %3295 = vmatprep.subr.mxu0 %v3445_v22 }
 0x65b   : > { %3296 = vmatpush3.msra.mxu0 %v2614_v7 }
 0x65c   : > { %3297 = vmatprep.subr.mxu0 %v3445_v22 }
 0x65d   : > { %3298 = vmatpush3.msra.mxu0 %v2613_v8 }
 0x65e   : > { %3299 = vmatprep.subr.mxu0 %v3445_v22 }
 0x65f   : > { %3300 = vmatpush3.msra.mxu0 %v2612_v9 }
 0x660   : > { %3301 = vmatprep.subr.mxu0 %v3445_v22 }
 0x661   : > { %3302 = vmatpush3.msra.mxu0 %v2611_v10 }
 0x662   : > { %3303 = vmatprep.subr.mxu0 %v3445_v22 }
 0x663   : > { %3304 = vmatpush3.msra.mxu0 %v2610_v11 }
 0x664   : > { %3305 = vmatprep.subr.mxu0 %v3445_v22 }
 0x665   : > { %3306 = vmatpush3.msra.mxu0 %v2609_v12 }
 0x666   : > { %3307 = vmatprep.subr.mxu0 %v3445_v22 }
 0x667   : > { %3308 = vmatpush3.msra.mxu0 %v2608_v13 }
 0x668   : > { %3309 = vmatprep.subr.mxu0 %v3445_v22 }
 0x669   : > { %3310 = vmatpush3.msra.mxu0 %v2607_v14 }
 0x66a   : > { %3311 = vmatprep.subr.mxu0 %v3445_v22  ;;  %v2708_v22 = vld [vmem:[%s4770_s14] sm:$0x1] }
 0x66b   : > { %3312 = vmatpush3.msra.mxu0 %v2606_v15 }
 0x6e5   : > { %v2260_v25 = vpop.f32.mrf.mxu0 }
 0x6e6   : > { %v2264_v60 = vadd.f32 %v2260_v25, %v2179_v44 }
 0x6e7   : > { %v3190_v26 = vpop.f32.mrf.mxu0  ;;  %v2430_v29 = vpop.f32.mrf.mxu1 }
 0x6e9   : > { %v3236_v59 = vpop.f32.mrf.mxu1 }
 0x6f9   : > { %v2345_v31 = vpop.f32.mrf.mxu0 }
 0x6fa   : > { %v2349_v35 = vadd.f32 %v2345_v31, %v2264_v60 }
 0x6fb   : > { %v3213_v32 = vpop.f32.mrf.mxu0 }
 0x6fc   : > { %v2600_v33 = vpop.f32.mrf.mxu1  ;;  %v2434_v27 = vadd.f32 %v2430_v29, %v2349_v35 }
 0x6fe   : > { %v3282_v34 = vpop.f32.mrf.mxu1 }
 0x70e   : > { %v2515_v36 = vpop.f32.mrf.mxu0 }
 0x70f   : > { %v2519_v37 = vadd.f32 %v2515_v36, %v2434_v27 }
 0x710   : > { %v3259_v38 = vpop.f32.mrf.mxu0 }
 0x711   : > { %v2604_v39 = vadd.f32 %v2600_v33, %v2519_v37 }
 0x713   : > { %v2605_v41 = vmax.f32 %v2604_v39, 0.0 }
 0x715   : > { %3314 = vmatmul.mubr.msk.f32.vlgmr.msra.gmra.mxu0 %vm2622_vm15, %v2605_v41 }
 0x7d5   : > { %v2692_v46 = vpop.f32.mrf.mxu0 }
 0x7d6   : > { %v2693_v47 = vadd.f32 %v2692_v46, %v2621_v45 }
 0x7d7   : > { %v3315_v48 = vpop.f32.mrf.mxu0 }
 0x7d8   : > { %v2696_v49 = vmax.f32 %v2693_v47, 0.0 }
 0x7da   : > { %3339 = vmatmul.mubr.msk.f32.vlgmr.msra.gmra.mxu1 %vm1424_vm9, %v2696_v49 }
 0x89a   : > { %v2781_v30 = vpop.f32.mrf.mxu1 }
 0x89b   : > { %v2782_v50 = vadd.f32 %v2781_v30, %v2708_v22 }
 0x89c   : > { %v3340_v51 = vpop.f32.mrf.mxu1 }
 0x89d   : > { %2786 = vst.msk [vmem:[%s486_s30] sm:$0x1] %vm2785_vm0, %v2782_v50 }
 0x89e   : > { %3396 = shalt.err (!%p3393_p3)
}
 0x89f   : > { %s3397_s20 = scalar_lea.hbm %s4721_s17, 16  ;;  %s3401_s30 = scalar_lea.hbm %s4771_s15, 32 }
 0x8a0   : > { %p3398_p4 = scmp.ne.s32.totalorder %s4721_s17, %s3397_s20  ;;  %p3402_p9 = scmp.lt.s32.totalorder %s4721_s17, %s4771_s15 }
 0x8a1   : > { %p3403_p10 = scmp.lt.s32.totalorder %s3401_s30, %s3397_s20 }
 0x8a2   : > { %p3399_p7 = pnand %p3398_p4, %p3567_p5 }
 0x8a3   : > { %p3404_p11 = por %p3403_p10, %p3402_p9 }
 0x8a4   : > { %p3400_p8 = pneg %p3399_p7 }
 0x8a6   : > { %p3405_p12 = pnand %p3404_p11, %p3400_p8 }
 0x8a8   : > { %3408 = shalt.err (!%p3405_p12)
}
 0x8a9   : > { %3341 = dma.vmem_to_hbm [thread:$0]  (%p3567_p5), %s2801_s29, 16, %s4721_s17, %s2788_s23  }
 0x8aa PF: > { %s4786_s25 = sld [smem:[#allocation7_spill]] }
 0x8ab   : > { %s4787_s22 = sld [smem:[#allocation5_spill]] }
 0x8b0   : > { %p3347_p13 = scmp.ge.s32.totalorder %s4786_s25, 2 }
 0x8b1   : > { %s2812_s26 = sand.u32 1, %s4787_s22  }
 0x8b2   : > { %p3344_p0 = pnand %p3347_p13, %p3571_p6  ;;  %s2813_s24 = scalar_lea.sflag [#allocation3], %s2812_s26 }
 0x8b4   : > { %p3345_p1 = pneg %p3344_p0 }
 0x8b6   : > { %3426 = dma.done.wait (%p3345_p1), %s2813_s24, 16  }
 0x8b7   : > { %3428 = vsyncadd (%p3345_p1), %s2813_s24, 4294967280  ;;  %s4789_s21 = sld [smem:[#allocation8_spill]]  ;;  %s4792_s18 = smov %s3435_s19 }
 0x8b8   : > { %s4790_s20 = sld [smem:[#allocation6_spill]] }
 0x8b9   : > { %s4791_s27 = sld [smem:[#allocation9_spill]] }
 0x8bd   : > { %p25_p2 = scmp.ge.s32.totalorder %s4789_s21, 4  }
 0x8be   : > { %s4793_s19 = smov %s4790_s20 }
 0x8bf   : > { %s4794_s20 = smov %s4791_s27  ;;  %27 = sbr.rel (!%p25_p2) target bundleno = 3 (0x3), region = 127 }
 0x8c4   :  { %2817 = vsyncpa [#allocation3], 1 }
 0x8c5   :  { %2819 = vsyncpa [#allocation3 + $0x1], 1 }

</bundles_post_ra>
